<compile_context>
chip_gen: v7x
topology: tpu7x:2x2x1
jax: 0.10.0
libtpu: 0.0.40
codegen_flags: <defaults>
</compile_context>

<pallas_src>
import functools

import numpy as np

import jax
import jax.numpy as jnp
from jax.experimental import pallas as pl
from jax.experimental.pallas import tpu as pltpu


# ----------------------------------------------------------------------------
# Host-side constant / weight folding helpers (tiny, run under jit)
# ----------------------------------------------------------------------------
def _fold_conv(w, win, wout):
    """Fold a (Cout, Cin, kh, kw) conv weight into per-kernel-row matmul mats.

    Returns U of shape (kh, Cin*win, Cout*wout) with
        U[di, c*win + ji, co*wout + jo] = w[co, c, di, ji - jo]   (0 <= ji-jo < kw)
    so that, with activations packed as rows=i and cols=(c*win + j),
        out[i, co*wout + jo] = sum_di  act[i + di, :] @ U[di]
    is exactly the valid, stride-1 convolution.
    """
    cout, cin, kh, kw = w.shape
    ji = np.arange(win)[:, None]
    jo = np.arange(wout)[None, :]
    dj = ji - jo                                        # (win, wout)
    mask = (dj >= 0) & (dj < kw)
    g = w[:, :, :, np.clip(dj, 0, kw - 1)]              # (Cout,Cin,kh,win,wout)
    g = jnp.where(mask[None, None, None], g, 0.0)
    g = jnp.transpose(g, (2, 1, 3, 0, 4))               # (kh,Cin,win,Cout,wout)
    return g.reshape(kh, cin * win, cout * wout).astype(jnp.float32)


def _pool_mats(h, w, c):
    """Constant matrices for a 2x2 stride-2 avg-pool on a packed (h, c*w) slab:
    pooled = PH @ (act @ PWblk);  PH: (h//2, h), PWblk: (c*w, c*(w//2))."""
    ph = np.zeros((h // 2, h), np.float32)
    ph[np.arange(h // 2), 2 * np.arange(h // 2)] = 0.5
    ph[np.arange(h // 2), 2 * np.arange(h // 2) + 1] = 0.5
    pw = np.zeros((w, w // 2), np.float32)
    pw[2 * np.arange(w // 2), np.arange(w // 2)] = 0.5
    pw[2 * np.arange(w // 2) + 1, np.arange(w // 2)] = 0.5
    pw_blk = np.kron(np.eye(c, dtype=np.float32), pw)   # channel-major block diag
    return jnp.asarray(ph), jnp.asarray(pw_blk)


# ----------------------------------------------------------------------------
# The single fused Pallas kernel
# ----------------------------------------------------------------------------
def _lenet5_kernel(x_ref, u1_ref, b1_ref, pw1_ref, ph1_ref,
                   u2_ref, b2_ref, pw2_ref, ph2_ref,
                   u3_ref, b3_ref, w4_ref, b4_ref, w5_ref, b5_ref,
                   o_ref, *, tb):
    dot = functools.partial(jnp.dot, preferred_element_type=jnp.float32)

    # Resident (same block every grid step) weights / constants.
    ph1, pw1 = ph1_ref[...], pw1_ref[...]
    ph2, pw2 = ph2_ref[...], pw2_ref[...]
    w4, w5 = w4_ref[...], w5_ref[...]
    b1, b2, b3 = b1_ref[...], b2_ref[...], b3_ref[...]
    b4, b5 = b4_ref[...], b5_ref[...]

    for b in range(tb):                                  # static, small unroll
        x = x_ref[b]                                     # (32, 32) f32

        # conv1: 5x5, 1 -> 6, + bias + tanh; packed cols = (co*28 + j)
        a1 = b1
        for di in range(5):
            a1 = a1 + dot(x[di:di + 28, :], u1_ref[di])  # (28, 168)
        a1 = jnp.tanh(a1)
        # avg-pool 2x2 stride 2 -> (14, 84), packed cols = (c*14 + j)
        p1 = dot(ph1, dot(a1, pw1))

        # conv2: 5x5, 6 -> 16, + bias + tanh; packed cols = (k*10 + j)
        a2 = b2
        for di in range(5):
            a2 = a2 + dot(p1[di:di + 10, :], u2_ref[di])  # (10, 160)
        a2 = jnp.tanh(a2)
        # avg-pool 2x2 stride 2 -> (5, 80), packed cols = (k*5 + v)
        p2 = dot(ph2, dot(a2, pw2))

        # conv3: 5x5, 16 -> 120 (5x5 spatial -> 1x1), + bias + tanh
        h3 = b3
        for u in range(5):
            h3 = h3 + dot(p2[u:u + 1, :], u3_ref[u])      # (1, 120)
        h3 = jnp.tanh(h3)

        # fc1 + tanh, fc2
        h4 = jnp.tanh(dot(h3, w4) + b4)                   # (1, 84)
        logits = dot(h4, w5) + b5                         # (1, num_classes)

        # exact softmax (f32 epilogue; rows sum to 1 to ~1e-6)
        m = jnp.max(logits, axis=-1, keepdims=True)
        e = jnp.exp(logits - m)
        o_ref[b] = e / jnp.sum(e, axis=-1, keepdims=True)


# ----------------------------------------------------------------------------
# Wrapper
# ----------------------------------------------------------------------------
def lenet5_forward(params, x, *, tb=None):
    """x: (B, 1, 32, 32) NCHW f32.  Returns (B, num_classes) softmax probs."""
    B = x.shape[0]
    num_classes = params["fc2_w"].shape[1]
    if tb is None:
        tb = 1 if B <= 8 else 8       # keeps grid >= 2 whenever B >= 2 (v7x)
    nb = pl.cdiv(B, tb)
    bpad = nb * tb

    x2 = x[:, 0].astype(jnp.float32)                      # (B, 32, 32)
    if bpad != B:
        x2 = jnp.pad(x2, ((0, bpad - B), (0, 0), (0, 0)))

    # Fold conv weights / build pooling constants (tiny host-side glue).
    u1 = _fold_conv(params["conv1_w"], 32, 28)            # (5,  32, 168)
    u2 = _fold_conv(params["conv2_w"], 14, 10)            # (5,  84, 160)
    u3 = _fold_conv(params["conv3_w"], 5, 1)              # (5,  80, 120)
    b1 = jnp.repeat(params["conv1_b"].astype(jnp.float32), 28)[None, :]
    b2 = jnp.repeat(params["conv2_b"].astype(jnp.float32), 10)[None, :]
    b3 = params["conv3_b"].astype(jnp.float32)[None, :]
    w4 = params["fc1_w"].astype(jnp.float32)
    b4 = params["fc1_b"].astype(jnp.float32)[None, :]
    w5 = params["fc2_w"].astype(jnp.float32)
    b5 = params["fc2_b"].astype(jnp.float32)[None, :]
    ph1, pw1 = _pool_mats(28, 28, 6)                      # (14,28), (168,84)
    ph2, pw2 = _pool_mats(10, 10, 16)                     # (5,10),  (160,80)

    def full_spec(a):
        # Resident weight: whole array, same block at every grid step.
        if a.ndim == 2:
            return pl.BlockSpec(a.shape, lambda i: (0, 0))
        return pl.BlockSpec(a.shape, lambda i: (0, 0, 0))

    ins = (x2, u1, b1, pw1, ph1, u2, b2, pw2, ph2, u3, b3, w4, b4, w5, b5)
    in_specs = [pl.BlockSpec((tb, 32, 32), lambda i: (i, 0, 0))]
    in_specs += [full_spec(a) for a in ins[1:]]

    out = pl.pallas_call(
        functools.partial(_lenet5_kernel, tb=tb),
        out_shape=jax.ShapeDtypeStruct((bpad, 1, num_classes), jnp.float32),
        grid=(nb,),
        in_specs=in_specs,
        out_specs=pl.BlockSpec((tb, 1, num_classes), lambda i: (i, 0, 0)),
        compiler_params=pltpu.CompilerParams(
            dimension_semantics=("parallel",),
            vmem_limit_bytes=32 * 1024 * 1024,
        ),
    )(*ins)
    return out[:B, 0, :]


# ----------------------------------------------------------------------------
# LeNet-5 parameters (PyTorch-style layout) + pure-JAX f32 reference
# ----------------------------------------------------------------------------
def init_params(key, num_classes=10):
    """Deterministic init (uniform +/- 1/sqrt(fan_in), like PyTorch default)."""
    def uni(k, shape, fan_in):
        bound = 1.0 / jnp.sqrt(fan_in)
        return jax.random.uniform(k, shape, jnp.float32, -bound, bound)

    ks = jax.random.split(key, 10)
    p = {}
    p["conv1_w"] = uni(ks[0], (6, 1, 5, 5), 1 * 25)
    p["conv1_b"] = uni(ks[1], (6,), 1 * 25)
    p["conv2_w"] = uni(ks[2], (16, 6, 5, 5), 6 * 25)
    p["conv2_b"] = uni(ks[3], (16,), 6 * 25)
    p["conv3_w"] = uni(ks[4], (120, 16, 5, 5), 16 * 25)
    p["conv3_b"] = uni(ks[5], (120,), 16 * 25)
    # linear weights stored as (in, out)
    p["fc1_w"] = uni(ks[6], (120, 84), 120)
    p["fc1_b"] = uni(ks[7], (84,), 120)
    p["fc2_w"] = uni(ks[8], (84, num_classes), 84)
    p["fc2_b"] = uni(ks[9], (num_classes,), 84)
    return p


def _reference_forward(params, x):
    def conv(h, w, b):
        y = jax.lax.conv_general_dilated(
            h, w, window_strides=(1, 1), padding="VALID",
            dimension_numbers=("NCHW", "OIHW", "NCHW"))
        return jnp.tanh(y + b.reshape(1, -1, 1, 1))

    def pool(h):
        B, C, H, W = h.shape
        return h.reshape(B, C, H // 2, 2, W // 2, 2).mean(axis=(3, 5))

    h = conv(x, params["conv1_w"], params["conv1_b"])
    h = pool(h)
    h = conv(h, params["conv2_w"], params["conv2_b"])
    h = pool(h)
    h = conv(h, params["conv3_w"], params["conv3_b"])
    h = h.reshape(h.shape[0], -1)
    h = jnp.tanh(h @ params["fc1_w"] + params["fc1_b"])
    logits = h @ params["fc2_w"] + params["fc2_b"]
    return jax.nn.softmax(logits, axis=-1)


if __name__ == "__main__":
    num_classes = 10
    batch = 2
    key = jax.random.PRNGKey(0)
    pkey, xkey = jax.random.split(key)

    params = init_params(pkey, num_classes=num_classes)
    # LeNet-5 requires 32x32 single-channel input so the conv stack reduces to
    # 1x1 spatial before flattening.
    x = jax.random.normal(xkey, (batch, 1, 32, 32), dtype=jnp.float32)

    fwd = jax.jit(lenet5_forward)
    out = jax.block_until_ready(fwd(params, x))

    assert out.shape == (batch, num_classes)
    assert bool(jnp.all(jnp.isfinite(out)))
    # exact softmax -> rows sum to 1 tightly
    assert bool(jnp.allclose(jnp.sum(out, axis=1), 1.0, atol=1e-5))
    # f32 end-to-end -> tight agreement with the pure-JAX f32 reference
    ref = _reference_forward(params, x)
    assert bool(jnp.allclose(out, ref, atol=2e-3))
    print("KERNEL_OK")
</pallas_src>

<mosaic_0001>
module attributes {stable_mosaic.version = 11 : i64} {
  func.func @_lenet5_kernel(%arg0: i32, %arg1: memref<1x32x32xf32, #tpu.memory_space<vmem>>, %arg2: memref<5x32x168xf32, #tpu.memory_space<vmem>>, %arg3: memref<1x168xf32, #tpu.memory_space<vmem>>, %arg4: memref<168x84xf32, #tpu.memory_space<vmem>>, %arg5: memref<14x28xf32, #tpu.memory_space<vmem>>, %arg6: memref<5x84x160xf32, #tpu.memory_space<vmem>>, %arg7: memref<1x160xf32, #tpu.memory_space<vmem>>, %arg8: memref<160x80xf32, #tpu.memory_space<vmem>>, %arg9: memref<5x10xf32, #tpu.memory_space<vmem>>, %arg10: memref<5x80x120xf32, #tpu.memory_space<vmem>>, %arg11: memref<1x120xf32, #tpu.memory_space<vmem>>, %arg12: memref<120x84xf32, #tpu.memory_space<vmem>>, %arg13: memref<1x84xf32, #tpu.memory_space<vmem>>, %arg14: memref<84x10xf32, #tpu.memory_space<vmem>>, %arg15: memref<1x10xf32, #tpu.memory_space<vmem>>, %arg16: memref<1x1x10xf32, #tpu.memory_space<vmem>>) attributes {dimension_semantics = [#tpu.dimension_semantics<parallel>], iteration_bounds = array<i64: 2>, scalar_prefetch = 0 : i64, scratch_operands = 0 : i64, tpu.core_type = #tpu.core_type<tc>, window_params = [{transform_indices = @transform_0, window_bounds = array<i64: 1, 32, 32>}, {pipeline_mode = #tpu.pipeline_mode<synchronous>, transform_indices = @transform_1, window_bounds = array<i64: 5, 32, 168>}, {pipeline_mode = #tpu.pipeline_mode<synchronous>, transform_indices = @transform_2, window_bounds = array<i64: 1, 168>}, {pipeline_mode = #tpu.pipeline_mode<synchronous>, transform_indices = @transform_3, window_bounds = array<i64: 168, 84>}, {pipeline_mode = #tpu.pipeline_mode<synchronous>, transform_indices = @transform_4, window_bounds = array<i64: 14, 28>}, {pipeline_mode = #tpu.pipeline_mode<synchronous>, transform_indices = @transform_5, window_bounds = array<i64: 5, 84, 160>}, {pipeline_mode = #tpu.pipeline_mode<synchronous>, transform_indices = @transform_6, window_bounds = array<i64: 1, 160>}, {pipeline_mode = #tpu.pipeline_mode<synchronous>, transform_indices = @transform_7, window_bounds = array<i64: 160, 80>}, {pipeline_mode = #tpu.pipeline_mode<synchronous>, transform_indices = @transform_8, window_bounds = array<i64: 5, 10>}, {pipeline_mode = #tpu.pipeline_mode<synchronous>, transform_indices = @transform_9, window_bounds = array<i64: 5, 80, 120>}, {pipeline_mode = #tpu.pipeline_mode<synchronous>, transform_indices = @transform_10, window_bounds = array<i64: 1, 120>}, {pipeline_mode = #tpu.pipeline_mode<synchronous>, transform_indices = @transform_11, window_bounds = array<i64: 120, 84>}, {pipeline_mode = #tpu.pipeline_mode<synchronous>, transform_indices = @transform_12, window_bounds = array<i64: 1, 84>}, {pipeline_mode = #tpu.pipeline_mode<synchronous>, transform_indices = @transform_13, window_bounds = array<i64: 84, 10>}, {pipeline_mode = #tpu.pipeline_mode<synchronous>, transform_indices = @transform_14, window_bounds = array<i64: 1, 10>}, {transform_indices = @transform_15, window_bounds = array<i64: 1, 1, 10>}]} {
    %c0 = arith.constant 0 : index
    %c0_0 = arith.constant 0 : index
    %0 = vector.load %arg5[%c0, %c0_0] : memref<14x28xf32, #tpu.memory_space<vmem>>, vector<14x28xf32>
    %c0_1 = arith.constant 0 : index
    %c0_2 = arith.constant 0 : index
    %1 = vector.load %arg4[%c0_1, %c0_2] : memref<168x84xf32, #tpu.memory_space<vmem>>, vector<168x84xf32>
    %c0_3 = arith.constant 0 : index
    %c0_4 = arith.constant 0 : index
    %2 = vector.load %arg9[%c0_3, %c0_4] : memref<5x10xf32, #tpu.memory_space<vmem>>, vector<5x10xf32>
    %c0_5 = arith.constant 0 : index
    %c0_6 = arith.constant 0 : index
    %3 = vector.load %arg8[%c0_5, %c0_6] : memref<160x80xf32, #tpu.memory_space<vmem>>, vector<160x80xf32>
    %c0_7 = arith.constant 0 : index
    %c0_8 = arith.constant 0 : index
    %4 = vector.load %arg12[%c0_7, %c0_8] : memref<120x84xf32, #tpu.memory_space<vmem>>, vector<120x84xf32>
    %c0_9 = arith.constant 0 : index
    %c0_10 = arith.constant 0 : index
    %5 = vector.load %arg14[%c0_9, %c0_10] : memref<84x10xf32, #tpu.memory_space<vmem>>, vector<84x10xf32>
    %c0_11 = arith.constant 0 : index
    %c0_12 = arith.constant 0 : index
    %6 = vector.load %arg3[%c0_11, %c0_12] : memref<1x168xf32, #tpu.memory_space<vmem>>, vector<1x168xf32>
    %c0_13 = arith.constant 0 : index
    %c0_14 = arith.constant 0 : index
    %7 = vector.load %arg7[%c0_13, %c0_14] : memref<1x160xf32, #tpu.memory_space<vmem>>, vector<1x160xf32>
    %c0_15 = arith.constant 0 : index
    %c0_16 = arith.constant 0 : index
    %8 = vector.load %arg11[%c0_15, %c0_16] : memref<1x120xf32, #tpu.memory_space<vmem>>, vector<1x120xf32>
    %c0_17 = arith.constant 0 : index
    %c0_18 = arith.constant 0 : index
    %9 = vector.load %arg13[%c0_17, %c0_18] : memref<1x84xf32, #tpu.memory_space<vmem>>, vector<1x84xf32>
    %c0_19 = arith.constant 0 : index
    %c0_20 = arith.constant 0 : index
    %10 = vector.load %arg15[%c0_19, %c0_20] : memref<1x10xf32, #tpu.memory_space<vmem>>, vector<1x10xf32>
    %c0_21 = arith.constant 0 : index
    %c0_22 = arith.constant 0 : index
    %c0_23 = arith.constant 0 : index
    %11 = vector.load %arg1[%c0_21, %c0_22, %c0_23] : memref<1x32x32xf32, #tpu.memory_space<vmem>>, vector<1x32x32xf32>
    %12 = vector.shape_cast %11 : vector<1x32x32xf32> to vector<32x32xf32>
    %13 = vector.extract_strided_slice %12 {offsets = [0, 0], sizes = [28, 32], strides = [1, 1]} : vector<32x32xf32> to vector<28x32xf32>
    %c0_24 = arith.constant 0 : index
    %c0_25 = arith.constant 0 : index
    %c0_26 = arith.constant 0 : index
    %14 = vector.load %arg2[%c0_24, %c0_25, %c0_26] : memref<5x32x168xf32, #tpu.memory_space<vmem>>, vector<1x32x168xf32>
    %15 = vector.shape_cast %14 : vector<1x32x168xf32> to vector<32x168xf32>
    %cst = arith.constant dense<0.000000e+00> : vector<28x168xf32>
    %16 = tpu.matmul %13, %15, %cst {dimension_numbers = #tpu.dot_dimension_numbers<[1], [0], [0], [1], [0, 0, 1, 1], [], []>} : vector<28x32xf32>, vector<32x168xf32>, vector<28x168xf32> -> vector<28x168xf32>
    %17 = vector.broadcast %6 : vector<1x168xf32> to vector<28x168xf32>
    %18 = arith.addf %17, %16 : vector<28x168xf32>
    %19 = vector.extract_strided_slice %12 {offsets = [1, 0], sizes = [28, 32], strides = [1, 1]} : vector<32x32xf32> to vector<28x32xf32>
    %c1 = arith.constant 1 : index
    %c0_27 = arith.constant 0 : index
    %c0_28 = arith.constant 0 : index
    %20 = vector.load %arg2[%c1, %c0_27, %c0_28] : memref<5x32x168xf32, #tpu.memory_space<vmem>>, vector<1x32x168xf32>
    %21 = vector.shape_cast %20 : vector<1x32x168xf32> to vector<32x168xf32>
    %cst_29 = arith.constant dense<0.000000e+00> : vector<28x168xf32>
    %22 = tpu.matmul %19, %21, %cst_29 {dimension_numbers = #tpu.dot_dimension_numbers<[1], [0], [0], [1], [0, 0, 1, 1], [], []>} : vector<28x32xf32>, vector<32x168xf32>, vector<28x168xf32> -> vector<28x168xf32>
    %23 = arith.addf %18, %22 : vector<28x168xf32>
    %24 = vector.extract_strided_slice %12 {offsets = [2, 0], sizes = [28, 32], strides = [1, 1]} : vector<32x32xf32> to vector<28x32xf32>
    %c2 = arith.constant 2 : index
    %c0_30 = arith.constant 0 : index
    %c0_31 = arith.constant 0 : index
    %25 = vector.load %arg2[%c2, %c0_30, %c0_31] : memref<5x32x168xf32, #tpu.memory_space<vmem>>, vector<1x32x168xf32>
    %26 = vector.shape_cast %25 : vector<1x32x168xf32> to vector<32x168xf32>
    %cst_32 = arith.constant dense<0.000000e+00> : vector<28x168xf32>
    %27 = tpu.matmul %24, %26, %cst_32 {dimension_numbers = #tpu.dot_dimension_numbers<[1], [0], [0], [1], [0, 0, 1, 1], [], []>} : vector<28x32xf32>, vector<32x168xf32>, vector<28x168xf32> -> vector<28x168xf32>
    %28 = arith.addf %23, %27 : vector<28x168xf32>
    %29 = vector.extract_strided_slice %12 {offsets = [3, 0], sizes = [28, 32], strides = [1, 1]} : vector<32x32xf32> to vector<28x32xf32>
    %c3 = arith.constant 3 : index
    %c0_33 = arith.constant 0 : index
    %c0_34 = arith.constant 0 : index
    %30 = vector.load %arg2[%c3, %c0_33, %c0_34] : memref<5x32x168xf32, #tpu.memory_space<vmem>>, vector<1x32x168xf32>
    %31 = vector.shape_cast %30 : vector<1x32x168xf32> to vector<32x168xf32>
    %cst_35 = arith.constant dense<0.000000e+00> : vector<28x168xf32>
    %32 = tpu.matmul %29, %31, %cst_35 {dimension_numbers = #tpu.dot_dimension_numbers<[1], [0], [0], [1], [0, 0, 1, 1], [], []>} : vector<28x32xf32>, vector<32x168xf32>, vector<28x168xf32> -> vector<28x168xf32>
    %33 = arith.addf %28, %32 : vector<28x168xf32>
    %34 = vector.extract_strided_slice %12 {offsets = [4, 0], sizes = [28, 32], strides = [1, 1]} : vector<32x32xf32> to vector<28x32xf32>
    %c4 = arith.constant 4 : index
    %c0_36 = arith.constant 0 : index
    %c0_37 = arith.constant 0 : index
    %35 = vector.load %arg2[%c4, %c0_36, %c0_37] : memref<5x32x168xf32, #tpu.memory_space<vmem>>, vector<1x32x168xf32>
    %36 = vector.shape_cast %35 : vector<1x32x168xf32> to vector<32x168xf32>
    %cst_38 = arith.constant dense<0.000000e+00> : vector<28x168xf32>
    %37 = tpu.matmul %34, %36, %cst_38 {dimension_numbers = #tpu.dot_dimension_numbers<[1], [0], [0], [1], [0, 0, 1, 1], [], []>} : vector<28x32xf32>, vector<32x168xf32>, vector<28x168xf32> -> vector<28x168xf32>
    %38 = arith.addf %33, %37 : vector<28x168xf32>
    %39 = math.tanh %38 : vector<28x168xf32>
    %cst_39 = arith.constant dense<0.000000e+00> : vector<28x84xf32>
    %40 = tpu.matmul %39, %1, %cst_39 {dimension_numbers = #tpu.dot_dimension_numbers<[1], [0], [0], [1], [0, 0, 1, 1], [], []>} : vector<28x168xf32>, vector<168x84xf32>, vector<28x84xf32> -> vector<28x84xf32>
    %cst_40 = arith.constant dense<0.000000e+00> : vector<14x84xf32>
    %41 = tpu.matmul %0, %40, %cst_40 {dimension_numbers = #tpu.dot_dimension_numbers<[1], [0], [0], [1], [0, 0, 1, 1], [], []>} : vector<14x28xf32>, vector<28x84xf32>, vector<14x84xf32> -> vector<14x84xf32>
    %42 = vector.extract_strided_slice %41 {offsets = [0, 0], sizes = [10, 84], strides = [1, 1]} : vector<14x84xf32> to vector<10x84xf32>
    %c0_41 = arith.constant 0 : index
    %c0_42 = arith.constant 0 : index
    %c0_43 = arith.constant 0 : index
    %43 = vector.load %arg6[%c0_41, %c0_42, %c0_43] : memref<5x84x160xf32, #tpu.memory_space<vmem>>, vector<1x84x160xf32>
    %44 = vector.shape_cast %43 : vector<1x84x160xf32> to vector<84x160xf32>
    %cst_44 = arith.constant dense<0.000000e+00> : vector<10x160xf32>
    %45 = tpu.matmul %42, %44, %cst_44 {dimension_numbers = #tpu.dot_dimension_numbers<[1], [0], [0], [1], [0, 0, 1, 1], [], []>} : vector<10x84xf32>, vector<84x160xf32>, vector<10x160xf32> -> vector<10x160xf32>
    %46 = vector.broadcast %7 : vector<1x160xf32> to vector<10x160xf32>
    %47 = arith.addf %46, %45 : vector<10x160xf32>
    %48 = vector.extract_strided_slice %41 {offsets = [1, 0], sizes = [10, 84], strides = [1, 1]} : vector<14x84xf32> to vector<10x84xf32>
    %c1_45 = arith.constant 1 : index
    %c0_46 = arith.constant 0 : index
    %c0_47 = arith.constant 0 : index
    %49 = vector.load %arg6[%c1_45, %c0_46, %c0_47] : memref<5x84x160xf32, #tpu.memory_space<vmem>>, vector<1x84x160xf32>
    %50 = vector.shape_cast %49 : vector<1x84x160xf32> to vector<84x160xf32>
    %cst_48 = arith.constant dense<0.000000e+00> : vector<10x160xf32>
    %51 = tpu.matmul %48, %50, %cst_48 {dimension_numbers = #tpu.dot_dimension_numbers<[1], [0], [0], [1], [0, 0, 1, 1], [], []>} : vector<10x84xf32>, vector<84x160xf32>, vector<10x160xf32> -> vector<10x160xf32>
    %52 = arith.addf %47, %51 : vector<10x160xf32>
    %53 = vector.extract_strided_slice %41 {offsets = [2, 0], sizes = [10, 84], strides = [1, 1]} : vector<14x84xf32> to vector<10x84xf32>
    %c2_49 = arith.constant 2 : index
    %c0_50 = arith.constant 0 : index
    %c0_51 = arith.constant 0 : index
    %54 = vector.load %arg6[%c2_49, %c0_50, %c0_51] : memref<5x84x160xf32, #tpu.memory_space<vmem>>, vector<1x84x160xf32>
    %55 = vector.shape_cast %54 : vector<1x84x160xf32> to vector<84x160xf32>
    %cst_52 = arith.constant dense<0.000000e+00> : vector<10x160xf32>
    %56 = tpu.matmul %53, %55, %cst_52 {dimension_numbers = #tpu.dot_dimension_numbers<[1], [0], [0], [1], [0, 0, 1, 1], [], []>} : vector<10x84xf32>, vector<84x160xf32>, vector<10x160xf32> -> vector<10x160xf32>
    %57 = arith.addf %52, %56 : vector<10x160xf32>
    %58 = vector.extract_strided_slice %41 {offsets = [3, 0], sizes = [10, 84], strides = [1, 1]} : vector<14x84xf32> to vector<10x84xf32>
    %c3_53 = arith.constant 3 : index
    %c0_54 = arith.constant 0 : index
    %c0_55 = arith.constant 0 : index
    %59 = vector.load %arg6[%c3_53, %c0_54, %c0_55] : memref<5x84x160xf32, #tpu.memory_space<vmem>>, vector<1x84x160xf32>
    %60 = vector.shape_cast %59 : vector<1x84x160xf32> to vector<84x160xf32>
    %cst_56 = arith.constant dense<0.000000e+00> : vector<10x160xf32>
    %61 = tpu.matmul %58, %60, %cst_56 {dimension_numbers = #tpu.dot_dimension_numbers<[1], [0], [0], [1], [0, 0, 1, 1], [], []>} : vector<10x84xf32>, vector<84x160xf32>, vector<10x160xf32> -> vector<10x160xf32>
    %62 = arith.addf %57, %61 : vector<10x160xf32>
    %63 = vector.extract_strided_slice %41 {offsets = [4, 0], sizes = [10, 84], strides = [1, 1]} : vector<14x84xf32> to vector<10x84xf32>
    %c4_57 = arith.constant 4 : index
    %c0_58 = arith.constant 0 : index
    %c0_59 = arith.constant 0 : index
    %64 = vector.load %arg6[%c4_57, %c0_58, %c0_59] : memref<5x84x160xf32, #tpu.memory_space<vmem>>, vector<1x84x160xf32>
    %65 = vector.shape_cast %64 : vector<1x84x160xf32> to vector<84x160xf32>
    %cst_60 = arith.constant dense<0.000000e+00> : vector<10x160xf32>
    %66 = tpu.matmul %63, %65, %cst_60 {dimension_numbers = #tpu.dot_dimension_numbers<[1], [0], [0], [1], [0, 0, 1, 1], [], []>} : vector<10x84xf32>, vector<84x160xf32>, vector<10x160xf32> -> vector<10x160xf32>
    %67 = arith.addf %62, %66 : vector<10x160xf32>
    %68 = math.tanh %67 : vector<10x160xf32>
    %cst_61 = arith.constant dense<0.000000e+00> : vector<10x80xf32>
    %69 = tpu.matmul %68, %3, %cst_61 {dimension_numbers = #tpu.dot_dimension_numbers<[1], [0], [0], [1], [0, 0, 1, 1], [], []>} : vector<10x160xf32>, vector<160x80xf32>, vector<10x80xf32> -> vector<10x80xf32>
    %cst_62 = arith.constant dense<0.000000e+00> : vector<5x80xf32>
    %70 = tpu.matmul %2, %69, %cst_62 {dimension_numbers = #tpu.dot_dimension_numbers<[1], [0], [0], [1], [0, 0, 1, 1], [], []>} : vector<5x10xf32>, vector<10x80xf32>, vector<5x80xf32> -> vector<5x80xf32>
    %71 = vector.extract_strided_slice %70 {offsets = [0, 0], sizes = [1, 80], strides = [1, 1]} : vector<5x80xf32> to vector<1x80xf32>
    %c0_63 = arith.constant 0 : index
    %c0_64 = arith.constant 0 : index
    %c0_65 = arith.constant 0 : index
    %72 = vector.load %arg10[%c0_63, %c0_64, %c0_65] : memref<5x80x120xf32, #tpu.memory_space<vmem>>, vector<1x80x120xf32>
    %73 = vector.shape_cast %72 : vector<1x80x120xf32> to vector<80x120xf32>
    %cst_66 = arith.constant dense<0.000000e+00> : vector<1x120xf32>
    %74 = tpu.matmul %71, %73, %cst_66 {dimension_numbers = #tpu.dot_dimension_numbers<[1], [0], [0], [1], [0, 0, 1, 1], [], []>} : vector<1x80xf32>, vector<80x120xf32>, vector<1x120xf32> -> vector<1x120xf32>
    %75 = arith.addf %8, %74 : vector<1x120xf32>
    %76 = vector.extract_strided_slice %70 {offsets = [1, 0], sizes = [1, 80], strides = [1, 1]} : vector<5x80xf32> to vector<1x80xf32>
    %c1_67 = arith.constant 1 : index
    %c0_68 = arith.constant 0 : index
    %c0_69 = arith.constant 0 : index
    %77 = vector.load %arg10[%c1_67, %c0_68, %c0_69] : memref<5x80x120xf32, #tpu.memory_space<vmem>>, vector<1x80x120xf32>
    %78 = vector.shape_cast %77 : vector<1x80x120xf32> to vector<80x120xf32>
    %cst_70 = arith.constant dense<0.000000e+00> : vector<1x120xf32>
    %79 = tpu.matmul %76, %78, %cst_70 {dimension_numbers = #tpu.dot_dimension_numbers<[1], [0], [0], [1], [0, 0, 1, 1], [], []>} : vector<1x80xf32>, vector<80x120xf32>, vector<1x120xf32> -> vector<1x120xf32>
    %80 = arith.addf %75, %79 : vector<1x120xf32>
    %81 = vector.extract_strided_slice %70 {offsets = [2, 0], sizes = [1, 80], strides = [1, 1]} : vector<5x80xf32> to vector<1x80xf32>
    %c2_71 = arith.constant 2 : index
    %c0_72 = arith.constant 0 : index
    %c0_73 = arith.constant 0 : index
    %82 = vector.load %arg10[%c2_71, %c0_72, %c0_73] : memref<5x80x120xf32, #tpu.memory_space<vmem>>, vector<1x80x120xf32>
    %83 = vector.shape_cast %82 : vector<1x80x120xf32> to vector<80x120xf32>
    %cst_74 = arith.constant dense<0.000000e+00> : vector<1x120xf32>
    %84 = tpu.matmul %81, %83, %cst_74 {dimension_numbers = #tpu.dot_dimension_numbers<[1], [0], [0], [1], [0, 0, 1, 1], [], []>} : vector<1x80xf32>, vector<80x120xf32>, vector<1x120xf32> -> vector<1x120xf32>
    %85 = arith.addf %80, %84 : vector<1x120xf32>
    %86 = vector.extract_strided_slice %70 {offsets = [3, 0], sizes = [1, 80], strides = [1, 1]} : vector<5x80xf32> to vector<1x80xf32>
    %c3_75 = arith.constant 3 : index
    %c0_76 = arith.constant 0 : index
    %c0_77 = arith.constant 0 : index
    %87 = vector.load %arg10[%c3_75, %c0_76, %c0_77] : memref<5x80x120xf32, #tpu.memory_space<vmem>>, vector<1x80x120xf32>
    %88 = vector.shape_cast %87 : vector<1x80x120xf32> to vector<80x120xf32>
    %cst_78 = arith.constant dense<0.000000e+00> : vector<1x120xf32>
    %89 = tpu.matmul %86, %88, %cst_78 {dimension_numbers = #tpu.dot_dimension_numbers<[1], [0], [0], [1], [0, 0, 1, 1], [], []>} : vector<1x80xf32>, vector<80x120xf32>, vector<1x120xf32> -> vector<1x120xf32>
    %90 = arith.addf %85, %89 : vector<1x120xf32>
    %91 = vector.extract_strided_slice %70 {offsets = [4, 0], sizes = [1, 80], strides = [1, 1]} : vector<5x80xf32> to vector<1x80xf32>
    %c4_79 = arith.constant 4 : index
    %c0_80 = arith.constant 0 : index
    %c0_81 = arith.constant 0 : index
    %92 = vector.load %arg10[%c4_79, %c0_80, %c0_81] : memref<5x80x120xf32, #tpu.memory_space<vmem>>, vector<1x80x120xf32>
    %93 = vector.shape_cast %92 : vector<1x80x120xf32> to vector<80x120xf32>
    %cst_82 = arith.constant dense<0.000000e+00> : vector<1x120xf32>
    %94 = tpu.matmul %91, %93, %cst_82 {dimension_numbers = #tpu.dot_dimension_numbers<[1], [0], [0], [1], [0, 0, 1, 1], [], []>} : vector<1x80xf32>, vector<80x120xf32>, vector<1x120xf32> -> vector<1x120xf32>
    %95 = arith.addf %90, %94 : vector<1x120xf32>
    %96 = math.tanh %95 : vector<1x120xf32>
    %cst_83 = arith.constant dense<0.000000e+00> : vector<1x84xf32>
    %97 = tpu.matmul %96, %4, %cst_83 {dimension_numbers = #tpu.dot_dimension_numbers<[1], [0], [0], [1], [0, 0, 1, 1], [], []>} : vector<1x120xf32>, vector<120x84xf32>, vector<1x84xf32> -> vector<1x84xf32>
    %98 = arith.addf %97, %9 : vector<1x84xf32>
    %99 = math.tanh %98 : vector<1x84xf32>
    %cst_84 = arith.constant dense<0.000000e+00> : vector<1x10xf32>
    %100 = tpu.matmul %99, %5, %cst_84 {dimension_numbers = #tpu.dot_dimension_numbers<[1], [0], [0], [1], [0, 0, 1, 1], [], []>} : vector<1x84xf32>, vector<84x10xf32>, vector<1x10xf32> -> vector<1x10xf32>
    %101 = arith.addf %100, %10 : vector<1x10xf32>
    %cst_85 = arith.constant dense<0xFF800000> : vector<1xf32>
    %102 = vector.multi_reduction <maximumf>, %101, %cst_85 [1] : vector<1x10xf32> to vector<1xf32>
    %103 = vector.shape_cast %102 : vector<1xf32> to vector<1x1xf32>
    %104 = vector.broadcast %103 : vector<1x1xf32> to vector<1x10xf32>
    %105 = arith.subf %101, %104 : vector<1x10xf32>
    %106 = math.exp %105 : vector<1x10xf32>
    %cst_86 = arith.constant dense<0.000000e+00> : vector<1xf32>
    %107 = vector.multi_reduction <add>, %106, %cst_86 [1] : vector<1x10xf32> to vector<1xf32>
    %108 = vector.shape_cast %107 : vector<1xf32> to vector<1x1xf32>
    %109 = vector.broadcast %108 : vector<1x1xf32> to vector<1x10xf32>
    %110 = arith.divf %106, %109 : vector<1x10xf32>
    %c0_87 = arith.constant 0 : index
    %c0_88 = arith.constant 0 : index
    %c0_89 = arith.constant 0 : index
    %111 = vector.load %arg16[%c0_87, %c0_88, %c0_89] : memref<1x1x10xf32, #tpu.memory_space<vmem>>, vector<1x1x10xf32>
    %112 = vector.shape_cast %111 : vector<1x1x10xf32> to vector<1x10xf32>
    %113 = vector.shape_cast %110 : vector<1x10xf32> to vector<1x1x10xf32>
    tpu.vector_store %arg16[%c0_87, %c0_88, %c0_89], %113 {strides = array<i32>} : memref<1x1x10xf32, #tpu.memory_space<vmem>>, vector<1x1x10xf32>,
    return
  }
  func.func @transform_0(%arg0: i32) -> (i32, i32, i32) {
    %c0_i32 = arith.constant 0 : i32
    %c0_i32_0 = arith.constant 0 : i32
    %c0_i32_1 = arith.constant 0 : i32
    return %arg0, %c0_i32, %c0_i32_0 : i32, i32, i32
  }
  func.func @transform_1(%arg0: i32) -> (i32, i32, i32) {
    %c0_i32 = arith.constant 0 : i32
    %c0_i32_0 = arith.constant 0 : i32
    %c0_i32_1 = arith.constant 0 : i32
    %c0_i32_2 = arith.constant 0 : i32
    return %c0_i32, %c0_i32_0, %c0_i32_1 : i32, i32, i32
  }
  func.func @transform_2(%arg0: i32) -> (i32, i32) {
    %c0_i32 = arith.constant 0 : i32
    %c0_i32_0 = arith.constant 0 : i32
    %c0_i32_1 = arith.constant 0 : i32
    return %c0_i32, %c0_i32_0 : i32, i32
  }
  func.func @transform_3(%arg0: i32) -> (i32, i32) {
    %c0_i32 = arith.constant 0 : i32
    %c0_i32_0 = arith.constant 0 : i32
    %c0_i32_1 = arith.constant 0 : i32
    return %c0_i32, %c0_i32_0 : i32, i32
  }
  func.func @transform_4(%arg0: i32) -> (i32, i32) {
    %c0_i32 = arith.constant 0 : i32
    %c0_i32_0 = arith.constant 0 : i32
    %c0_i32_1 = arith.constant 0 : i32
    return %c0_i32, %c0_i32_0 : i32, i32
  }
  func.func @transform_5(%arg0: i32) -> (i32, i32, i32) {
    %c0_i32 = arith.constant 0 : i32
    %c0_i32_0 = arith.constant 0 : i32
    %c0_i32_1 = arith.constant 0 : i32
    %c0_i32_2 = arith.constant 0 : i32
    return %c0_i32, %c0_i32_0, %c0_i32_1 : i32, i32, i32
  }
  func.func @transform_6(%arg0: i32) -> (i32, i32) {
    %c0_i32 = arith.constant 0 : i32
    %c0_i32_0 = arith.constant 0 : i32
    %c0_i32_1 = arith.constant 0 : i32
    return %c0_i32, %c0_i32_0 : i32, i32
  }
  func.func @transform_7(%arg0: i32) -> (i32, i32) {
    %c0_i32 = arith.constant 0 : i32
    %c0_i32_0 = arith.constant 0 : i32
    %c0_i32_1 = arith.constant 0 : i32
    return %c0_i32, %c0_i32_0 : i32, i32
  }
  func.func @transform_8(%arg0: i32) -> (i32, i32) {
    %c0_i32 = arith.constant 0 : i32
    %c0_i32_0 = arith.constant 0 : i32
    %c0_i32_1 = arith.constant 0 : i32
    return %c0_i32, %c0_i32_0 : i32, i32
  }
  func.func @transform_9(%arg0: i32) -> (i32, i32, i32) {
    %c0_i32 = arith.constant 0 : i32
    %c0_i32_0 = arith.constant 0 : i32
    %c0_i32_1 = arith.constant 0 : i32
    %c0_i32_2 = arith.constant 0 : i32
    return %c0_i32, %c0_i32_0, %c0_i32_1 : i32, i32, i32
  }
  func.func @transform_10(%arg0: i32) -> (i32, i32) {
    %c0_i32 = arith.constant 0 : i32
    %c0_i32_0 = arith.constant 0 : i32
    %c0_i32_1 = arith.constant 0 : i32
    return %c0_i32, %c0_i32_0 : i32, i32
  }
  func.func @transform_11(%arg0: i32) -> (i32, i32) {
    %c0_i32 = arith.constant 0 : i32
    %c0_i32_0 = arith.constant 0 : i32
    %c0_i32_1 = arith.constant 0 : i32
    return %c0_i32, %c0_i32_0 : i32, i32
  }
  func.func @transform_12(%arg0: i32) -> (i32, i32) {
    %c0_i32 = arith.constant 0 : i32
    %c0_i32_0 = arith.constant 0 : i32
    %c0_i32_1 = arith.constant 0 : i32
    return %c0_i32, %c0_i32_0 : i32, i32
  }
  func.func @transform_13(%arg0: i32) -> (i32, i32) {
    %c0_i32 = arith.constant 0 : i32
    %c0_i32_0 = arith.constant 0 : i32
    %c0_i32_1 = arith.constant 0 : i32
    return %c0_i32, %c0_i32_0 : i32, i32
  }
  func.func @transform_14(%arg0: i32) -> (i32, i32) {
    %c0_i32 = arith.constant 0 : i32
    %c0_i32_0 = arith.constant 0 : i32
    %c0_i32_1 = arith.constant 0 : i32
    return %c0_i32, %c0_i32_0 : i32, i32
  }
  func.func @transform_15(%arg0: i32) -> (i32, i32, i32) {
    %c0_i32 = arith.constant 0 : i32
    %c0_i32_0 = arith.constant 0 : i32
    %c0_i32_1 = arith.constant 0 : i32
    return %arg0, %c0_i32, %c0_i32_0 : i32, i32, i32
  }
}

</mosaic_0001>

<bundles_post_ra>
// kernel: lenet5_forward.1
= control target key start
LH: loop header
LB: loop body
LE: loop exit
PB: predicated region body
PF: predicated region fallthrough
CT: control target
= control target key end

     0   :  { %20 = vsyncpa [#allocation3], 0  ;;  %s5119_s0 = inlined_call_operand.vmem [shape: f32[2,32,32], index: 0, kind: input, shape index: {}]   ;;  %s5120_s1 = inlined_call_operand.vmem [shape: f32[5,32,168], index: 1, kind: input, shape index: {}]   ;;  %s5121_s2 = inlined_call_operand.vmem [shape: f32[1,168], index: 2, kind: input, shape index: {}]   ;;  %s5122_s3 = inlined_call_operand.vmem [shape: f32[168,84], index: 3, kind: input, shape index: {}]   ;;  %s5123_s4 = inlined_call_operand.vmem [shape: f32[14,28], index: 4, kind: input, shape index: {}]   ;;  %s5124_s5 = inlined_call_operand.vmem [shape: f32[5,84,160], index: 5, kind: input, shape index: {}]   ;;  %s5125_s6 = inlined_call_operand.vmem [shape: f32[1,160], index: 6, kind: input, shape index: {}]   ;;  %s5126_s7 = inlined_call_operand.vmem [shape: f32[160,80], index: 7, kind: input, shape index: {}]   ;;  %s5127_s8 = inlined_call_operand.vmem [shape: f32[5,10], index: 8, kind: input, shape index: {}]   ;;  %s5128_s9 = inlined_call_operand.vmem [shape: f32[5,80,120], index: 9, kind: input, shape index: {}]   ;;  %s5129_s10 = inlined_call_operand.vmem [shape: f32[1,120], index: 10, kind: input, shape index: {}]   ;;  %s5130_s11 = inlined_call_operand.vmem [shape: f32[120,84], index: 11, kind: input, shape index: {}]   ;;  %s5131_s12 = inlined_call_operand.vmem [shape: f32[1,84], index: 12, kind: input, shape index: {}]   ;;  %s5132_s13 = inlined_call_operand.vmem [shape: f32[84,10], index: 13, kind: input, shape index: {}]   ;;  %s5133_s14 = inlined_call_operand.vmem [shape: f32[1,10], index: 14, kind: input, shape index: {}]   ;;  %s5134_s15 = inlined_call_operand.hbm [shape: f32[2,1,10], index: 15, kind: output, shape index: {}]  }
   0x1   :  { %22 = vsyncpa [#allocation3 + $0x1], 0  ;;  %s3925_s18 = smov 0   ;;  %s3927_s19 = smov 0  }
   0x2   :  { %s3929_s20 = smov 0   ;;  %s3931_s21 = smov 0  }
   0x3 LB: > { %5141 = sst [smem:[#allocation5_spill]] %s3826_s18  ;;  %s3946_s22 = sadd.s32 4294967295, %s3838_s21   ;;  %s3838_s21 = sphi %s3931_s21, %s5152_s21   ;;  %s3834_s20 = sphi %s3929_s20, %s5154_s20   ;;  %s3830_s19 = sphi %s3927_s19, %s5156_s19   ;;  %s3826_s18 = sphi %s3925_s18, %s5155_s18  }
   0x4   : > { %5142 = sst [smem:[#allocation6_spill]] %s3834_s20  ;;  %s2795_s23 = sadd.s32 4294967294, %s3838_s21  }
   0x5   : > { %5143 = sst [smem:[#allocation7_spill]] %s3838_s21  ;;  %s3950_s24 = sadd.s32 1, %s3838_s21  }
   0x6   : > { %5144 = sst [smem:[#allocation8_spill]] %s3950_s24  ;;  %s355_s25 = sadd.s32 1, %s3834_s20 }
   0x7   : > { %s352_s26 = ssub.s32 %s3838_s21, %s3950_s24  ;;  %p365_p0 = scmp.ne.s32.totalorder %s3834_s20, %s3830_s19 }
   0x8   : > { %p353_p1 = scmp.eq.s32.totalorder %s352_s26, 0  ;;  %p366_p2 = scmp.eq.s32.totalorder %s3946_s22, 1 }
   0x9   : > { %p371_p3 = scmp.ne.s32.totalorder %s3830_s19, %s3826_s18  ;;  %p372_p4 = scmp.eq.s32.totalorder %s2795_s23, 1 }
   0xa   : > { %s3961_s27 = scalar_select %p353_p1, %s3834_s20, %s355_s25  }
   0xb   : > { %p3963_p5 = por %p366_p2, %p365_p0  ;;  %p3967_p6 = por %p372_p4, %p371_p3 }
   0xc   : > { %5145 = sst [smem:[#allocation9_spill]] %s3961_s27  ;;  %p2798_p7 = scmp.ge.s32.totalorder %s3838_s21, 1 }
   0xd   : > { %s5147_s29 = scalar_select %p3967_p6, 1, 0 }
   0xe   : > { %p440_p8 = scmp.lt.s32.totalorder %s3838_s21, 3 }
   0xf   : > { %5148 = sst [smem:[#allocation10_spill]] %s5147_s29 }
  0x10   : > { %p441_p9 = pnand %p2798_p7, %p440_p8 }
  0x11   : > { %v572_v0 = vld [vmem:[%s5120_s1 + $0x8] sm:$0xff] (!%p441_p9)  ;;  %v574_v1 = vld [vmem:[%s5120_s1 + $0x18] sm:$0xff] (!%p441_p9)  ;;  %v571_v2 = vld [vmem:[%s5120_s1] sm:$0xff] (!%p441_p9)  ;;  %p487_p10 = scmp.lt.s32.totalorder (!%p441_p9), %s3946_s22, 1  ;;  %v3840_v7 = vmov (!%p441_p9), 0.0   ;;  %v3841_v14 = vmov (!%p441_p9), 0.0|0.0  }
  0x12   : > { %444 = sbr.rel (%p441_p9) target bundleno = 2584 (0xa18), region = 80  ;;  %v3307_v3 = vpack.c.bf16 (!%p441_p9), %v574_v1, %v572_v0  ;;  %v573_v4 = vld [vmem:[%s5120_s1 + $0x10] sm:$0xff] (!%p441_p9)  ;;  %v576_v5 = vld [vmem:[%s5120_s1 + $0x28] sm:$0xff] (!%p441_p9)  ;;  %v578_v6 = vld [vmem:[%s5120_s1 + $0x38] sm:$0xff] (!%p441_p9)  ;;  %656 = vmatprep.mubr.f32.mxu0 (!%p441_p9), %v3840_v7  ;;  %3347 = vmatprep.subr.bf16.mxu1 (!%p441_p9), %v3841_v14  ;;  %vm579_vm0 = vcmask (!%p441_p9), 261120   ;;  %vm709_vm1 = vcmask (!%p441_p9), 1046528  }
  0x13   : > { %v3309_v8 = vpack.c.bf16 (!%p441_p9), %v573_v4, %v571_v2  ;;  %v3311_v9 = vpack.c.bf16 (!%p441_p9), %v578_v6, %v576_v5  ;;  %v575_v10 = vld [vmem:[%s5120_s1 + $0x20] sm:$0xff] (!%p441_p9)  ;;  %v577_v11 = vld [vmem:[%s5120_s1 + $0x30] sm:$0xff] (!%p441_p9)  ;;  %v2806_v12 = vld [vmem:[%s5120_s1 + $0x48] sm:$0xff] (!%p441_p9)  ;;  %vm831_vm2 = vcmask (!%p441_p9), 1045504   ;;  %vm953_vm3 = vcmask (!%p441_p9), 1044480   ;;  %s485_s29 = sand.u32 (!%p441_p9), 1, %s3830_s19  }
  0x14   : > { %3308 = vmatprep.subr.bf16.mxu0 (!%p441_p9), %v3307_v3  ;;  %v2808_v13 = vld [vmem:[%s5120_s1 + $0x58] sm:$0xff] (!%p441_p9)  ;;  %v3313_v15 = vpack.c.bf16 (!%p441_p9), %v577_v11, %v575_v10  ;;  %v2805_v17 = vld [vmem:[%s5120_s1 + $0x40] sm:$0xff] (!%p441_p9)  ;;  %v2807_v18 = vld [vmem:[%s5120_s1 + $0x50] sm:$0xff] (!%p441_p9)  ;;  %vm1075_vm4 = vcmask (!%p441_p9), 1043456   ;;  %vm1196_vm5 = vcmask (!%p441_p9), 326656   ;;  %vm1294_vm6 = vcmask (!%p441_p9), 228352  }
  0x15   : > { %3310 = vmatpush1.bf16.msra.mxu0 (!%p441_p9), %v3309_v8  ;;  %v3315_v16 = vpack.c.bf16 (!%p441_p9), %v2808_v13, %v2806_v12  ;;  %v2810_v19 = vld [vmem:[%s5120_s1 + $0x68] sm:$0xff] (!%p441_p9)  ;;  %v2812_v20 = vld [vmem:[%s5120_s1 + $0x78] sm:$0xff] (!%p441_p9)  ;;  %v3317_v22 = vpack.c.bf16 (!%p441_p9), %v2807_v18, %v2805_v17  ;;  %v2809_v24 = vld [vmem:[%s5120_s1 + $0x60] sm:$0xff] (!%p441_p9)  ;;  %vm3842_vm7 = vmmov (!%p441_p9), 1   ;;  %vm1401_vm9 = vcmask (!%p441_p9), 687104   ;;  %s3020_s26 = sshll.u32 (!%p441_p9), %s3946_s22, 4 }
  0x16   : > { %3312 = vmatprep.subr.bf16.mxu0 (!%p441_p9), %v3311_v9  ;;  %v3319_v23 = vpack.c.bf16 (!%p441_p9), %v2812_v20, %v2810_v19  ;;  %v2811_v25 = vld [vmem:[%s5120_s1 + $0x70] sm:$0xff] (!%p441_p9)  ;;  %v2818_v26 = vld [vmem:[%s5120_s1 + $0x88] sm:$0xff] (!%p441_p9)  ;;  %v2820_v27 = vld [vmem:[%s5120_s1 + $0x98] sm:$0xff] (!%p441_p9)  ;;  %vm3843_vm10 = vmmov (!%p441_p9), 0   ;;  %vm2063_vm11 = vcmask (!%p441_p9), 1041408   ;;  %vm2059_vm13 = vcmask (!%p441_p9), 80896   ;;  %s5076_s23 = scalar_lea.hbm (!%p441_p9), %s5134_s15, %s3020_s26 }
  0x17   : > { %v3321_v29 = vpack.c.bf16 (!%p441_p9), %v2811_v25, %v2809_v24  ;;  %v3323_v30 = vpack.c.bf16 (!%p441_p9), %v2820_v27, %v2818_v26  ;;  %v494_v31 = vld [vmem:[%s5122_s3] sm:$0xff] (!%p441_p9)  ;;  %v495_v32 = vld [vmem:[%s5122_s3 + $0x8] sm:$0xff] (!%p441_p9)  ;;  %v496_v35 = vld [vmem:[%s5122_s3 + $0x10] sm:$0xff] (!%p441_p9)  ;;  %vm2147_vm14 = vcmask (!%p441_p9), 654336   ;;  %vm2563_vm15 = vcmask (!%p441_p9), 982016   ;;  %s486_s30 = scalar_lea.vmem (!%p441_p9), [#allocation2], %s485_s29 }
  0x18   : > { %v3348_v34 = vpack.c.bf16 (!%p441_p9), %v495_v32, %v494_v31  ;;  %v497_v36 = vld [vmem:[%s5122_s3 + $0x18] sm:$0xff] (!%p441_p9)  ;;  %v498_v38 = vld [vmem:[%s5122_s3 + $0x20] sm:$0xff] (!%p441_p9)  ;;  %v499_v39 = vld [vmem:[%s5122_s3 + $0x28] sm:$0xff] (!%p441_p9)  ;;  %s2728_s20 = scalar_lea.sflag (!%p441_p9), [#allocation3], %s485_s29 }
  0x19   : > { %s488_s27 = scalar_select %p487_p10, %s3946_s22, 1  ;;  %3314 = vmatpush1.bf16.msra.mxu0 %v3313_v15  ;;  %v3351_v37 = vpack.c.bf16 %v497_v36, %v496_v35  ;;  %v2817_v43 = vld [vmem:[%s5120_s1 + $0x80] sm:$0xff]  ;;  %v2819_v44 = vld [vmem:[%s5120_s1 + $0x90] sm:$0xff]  ;;  %v2822_v45 = vld [vmem:[%s5120_s1 + $0xa8] sm:$0xff]  ;;  %v3354_v47 = vpack.c.bf16 %v499_v39, %v498_v38 }
  0x1a   : > { %3316 = vmatprep.subr.bf16.mxu0 %v3315_v16  ;;  %3349 = vmatpush1.bf16.msra.mxu1 %v3348_v34  ;;  %v2824_v46 = vld [vmem:[%s5120_s1 + $0xb8] sm:$0xff]  ;;  %v500_v48 = vld [vmem:[%s5122_s3 + $0x30] sm:$0xff]  ;;  %v3325_v52 = vpack.c.bf16 %v2819_v44, %v2817_v43  ;;  %v2821_v54 = vld [vmem:[%s5120_s1 + $0xa0] sm:$0xff]  ;;  %s3844_s22 = smov [#allocation2]  }
  0x1b   : > { %s3023_s16 = sshll.u32 %s488_s27, 5  ;;  %3350 = vmatprep.subr.bf16.mxu1 %v3841_v14  ;;  %v501_v49 = vld [vmem:[%s5122_s3 + $0x38] sm:$0xff]  ;;  %v3327_v53 = vpack.c.bf16 %v2824_v46, %v2822_v45  ;;  %v2823_v55 = vld [vmem:[%s5120_s1 + $0xb0] sm:$0xff]  ;;  %v2830_v56 = vld [vmem:[%s5120_s1 + $0xc8] sm:$0xff]  ;;  %s2740_s27 = sshll.u32 %s486_s30, 4  ;;  %s5078_s27 = int_to_ptr.vmem [resolvable:$true] %s2740_s27 }
  0x1c   : > { %s4010_s25 = scalar_lea.vmem %s5119_s0, %s3023_s16  ;;  %v2832_v57 = vld [vmem:[%s5120_s1 + $0xd8] sm:$0xff]  ;;  %v3357_v58 = vpack.c.bf16 %v501_v49, %v500_v48  ;;  %v502_v59 = vld [vmem:[%s5122_s3 + $0x40] sm:$0xff]  ;;  %v503_v60 = vld [vmem:[%s5122_s3 + $0x48] sm:$0xff]  ;;  %v3329_v63 = vpack.c.bf16 %v2823_v55, %v2821_v54  ;;  %s3776_s18 = scalar_lea.vmem %s5078_s27, 16 }
  0x1d   : > { %v4025_v21 = vld [vmem:[%s4010_s25] sm:$0xff]  ;;  %v4043_v28 = vld [vmem:[%s4010_s25 + $0x8] sm:$0xff]  ;;  %v4055_v33 = vld [vmem:[%s4010_s25 + $0x10] sm:$0xff]  ;;  %v3331_v0 = vpack.c.bf16 %v2832_v57, %v2830_v56  ;;  %v3360_v1 = vpack.c.bf16 %v503_v60, %v502_v59  ;;  %p3777_p11 = scmp.ne.s32.totalorder %s5078_s27, %s3776_s18  ;;  %s3780_s24 = sshll.u32 %s3844_s22, 4  ;;  %s3781_s24 = int_to_ptr.vmem [resolvable:$false] %s3780_s24 }
  0x1e   : > { %2801 = vmatmul.mubr.msk.f32.vlgmr.msra.gmra.mrb[0].mxu0 %vm579_vm0, %v4025_v21  ;;  %v710_v40 = vrot.slane %v4025_v21, 1  ;;  %v711_v41 = vrot.slane %v4043_v28, 1  ;;  %v4076_v42 = vld [vmem:[%s4010_s25 + $0x18] sm:$0xff]  ;;  %3352 = vmatpush1.bf16.msra.mxu1 %v3351_v37  ;;  %v713_v51 = vrot.slane %v4055_v33, 1  ;;  %v504_v2 = vld [vmem:[%s5122_s3 + $0x50] sm:$0xff]  ;;  %v506_v6 = vld [vmem:[%s5122_s3 + $0x60] sm:$0xff]  ;;  %p3783_p0 = scmp.lt.s32.totalorder %s5078_s27, %s3781_s24 }
  0x1f   : > { %662 = vmatprep.mubr.f32.mxu0 %v3840_v7  ;;  %3318 = vmatpush1.bf16.msra.mxu0 %v3317_v22  ;;  %v715_v62 = vrot.slane %v4076_v42, 1  ;;  %v505_v3 = vld [vmem:[%s5122_s3 + $0x58] sm:$0xff]  ;;  %v507_v8 = vld [vmem:[%s5122_s3 + $0x68] sm:$0xff]  ;;  %v832_v9 = vrot.slane %v4025_v21, 2  ;;  %v833_v10 = vrot.slane %v4043_v28, 2  ;;  %v2829_v11 = vld [vmem:[%s5120_s1 + $0xc0] sm:$0xff]  ;;  %p3778_p12 = pnand %p3777_p11, %p3963_p5 }
  0x20   : > { %3320 = vmatprep.subr.bf16.mxu0 %v3319_v23  ;;  %3353 = vmatprep.subr.bf16.mxu1 %v3841_v14  ;;  %v712_v50 = vsel %vm709_vm1, %v710_v40, %v711_v41  ;;  %v714_v61 = vsel %vm709_vm1, %v711_v41, %v713_v51  ;;  %v3363_v5 = vpack.c.bf16 %v505_v3, %v504_v2  ;;  %v2831_v12 = vld [vmem:[%s5120_s1 + $0xd0] sm:$0xff]  ;;  %v2834_v13 = vld [vmem:[%s5120_s1 + $0xe8] sm:$0xff]  ;;  %v2836_v15 = vld [vmem:[%s5120_s1 + $0xf8] sm:$0xff]  ;;  %v835_v18 = vrot.slane %v4055_v33, 2  ;;  %s3782_s25 = scalar_lea.vmem %s3781_s24, 32 }
  0x21   : > { %v716_v4 = vsel %vm709_vm1, %v713_v51, %v715_v62  ;;  %v3366_v16 = vpack.c.bf16 %v507_v8, %v506_v6  ;;  %v834_v17 = vsel %vm831_vm2, %v832_v9, %v833_v10  ;;  %v3333_v19 = vpack.c.bf16 %v2831_v12, %v2829_v11  ;;  %v2833_v22 = vld [vmem:[%s5120_s1 + $0xe0] sm:$0xff]  ;;  %v2835_v23 = vld [vmem:[%s5120_s1 + $0xf0] sm:$0xff]  ;;  %v2842_v24 = vld [vmem:[%s5120_s1 + $0x108] sm:$0xff]  ;;  %p3779_p13 = pneg %p3778_p12  ;;  %p3784_p1 = scmp.lt.s32.totalorder %s3782_s25, %s3776_s18 }
  0x22   : > { %2802 = vmatmul.mubr.msk.f32.gmra.mrb[2].mxu0 %vm579_vm0, %v4043_v28  ;;  %3355 = vmatpush1.bf16.msra.mxu1 %v3354_v47  ;;  %v3335_v20 = vpack.c.bf16 %v2836_v15, %v2834_v13  ;;  %v2844_v25 = vld [vmem:[%s5120_s1 + $0x118] sm:$0xff]  ;;  %v836_v26 = vsel %vm831_vm2, %v833_v10, %v835_v18  ;;  %v837_v27 = vrot.slane %v4076_v42, 2  ;;  %v954_v32 = vrot.slane %v4025_v21, 3  ;;  %v2841_v35 = vld [vmem:[%s5120_s1 + $0x100] sm:$0xff]  ;;  %v2843_v36 = vld [vmem:[%s5120_s1 + $0x110] sm:$0xff] }
  0x23   : > { %668 = vmatprep.mubr.f32.mxu0 %v3840_v7  ;;  %3322 = vmatpush1.bf16.msra.mxu0 %v3321_v29  ;;  %v3337_v29 = vpack.c.bf16 %v2835_v23, %v2833_v22  ;;  %v955_v34 = vrot.slane %v4043_v28, 3  ;;  %v2846_v37 = vld [vmem:[%s5120_s1 + $0x128] sm:$0xff]  ;;  %v2848_v38 = vld [vmem:[%s5120_s1 + $0x138] sm:$0xff]  ;;  %v957_v40 = vrot.slane %v4055_v33, 3  ;;  %v3341_v41 = vpack.c.bf16 %v2843_v36, %v2841_v35  ;;  %v2845_v44 = vld [vmem:[%s5120_s1 + $0x120] sm:$0xff]  ;;  %p3785_p2 = por %p3784_p1, %p3783_p0 }
  0x24   : > { %3324 = vmatprep.subr.bf16.mxu0 %v3323_v30  ;;  %3356 = vmatprep.subr.bf16.mxu1 %v3841_v14  ;;  %v3339_v30 = vpack.c.bf16 %v2844_v25, %v2842_v24  ;;  %v838_v31 = vsel %vm831_vm2, %v835_v18, %v837_v27  ;;  %v3343_v43 = vpack.c.bf16 %v2848_v38, %v2846_v37  ;;  %v2847_v45 = vld [vmem:[%s5120_s1 + $0x130] sm:$0xff]  ;;  %v959_v47 = vrot.slane %v4076_v42, 3  ;;  %v510_v56 = vld [vmem:[%s5122_s3 + $0x80] sm:$0xff]  ;;  %v511_v57 = vld [vmem:[%s5122_s3 + $0x88] sm:$0xff] }
  0x25   : > { %v956_v39 = vsel %vm953_vm3, %v954_v32, %v955_v34  ;;  %v958_v46 = vsel %vm953_vm3, %v955_v34, %v957_v40  ;;  %v3345_v48 = vpack.c.bf16 %v2847_v45, %v2845_v44  ;;  %v1077_v51 = vrot.slane %v4043_v28, 4  ;;  %v512_v59 = vld [vmem:[%s5122_s3 + $0x90] sm:$0xff]  ;;  %v513_v60 = vld [vmem:[%s5122_s3 + $0x98] sm:$0xff]  ;;  %v562_v2 = vld [vmem:[%s5121_s2] sm:$0x3]  ;;  %p3786_p3 = pnand %p3785_p2, %p3779_p13 }
  0x26   : > { %2803 = vmatmul.mubr.msk.f32.gmra.mrb[4].mxu0 %vm579_vm0, %v4055_v33  ;;  %3358 = vmatpush1.bf16.msra.mxu1 %v3357_v58  ;;  %v960_v49 = vsel %vm953_vm3, %v957_v40, %v959_v47  ;;  %v3372_v58 = vpack.c.bf16 %v511_v57, %v510_v56  ;;  %v492_v35 = vld [vmem:[%s5123_s4] sm:$0xff]  ;;  %v1380_v44 = vld [vmem:[%s5124_s5 + $0x8] sm:$0xff]  ;;  %v1382_v45 = vld [vmem:[%s5124_s5 + $0x18] sm:$0xff] }
  0x27   : > { %674 = vmatprep.mubr.f32.mxu0 %v3840_v7  ;;  %3359 = vmatprep.subr.bf16.mxu1 %v3841_v14  ;;  %vm3382_vm8 = vmpackc.low %vm1075_vm4, %vm3842_vm7  ;;  %v1390_v56 = vld [vmem:[%s5124_s5 + $0x58] sm:$0xff] }
  0x28   : > { %vm3519_vm12 = vmpackc.low %vm2063_vm11, %vm3842_vm7 }
  0x2a   : > { %2804 = vmatmul.mubr.msk.f32.gmra.mrb[6].mxu0 %vm579_vm0, %v4076_v42  ;;  %3361 = vmatpush1.bf16.msra.mxu1 %v3360_v1 }
  0x2b   : > { %789 = vmatprep.mubr.f32.mxu0 %v3840_v7  ;;  %3362 = vmatprep.subr.bf16.mxu1 %v3841_v14 }
  0x2e   : > { %2813 = vmatmul.mubr.msk.f32.vlgmr.msra.gmra.mrb[0].mxu0 %vm579_vm0, %v712_v50  ;;  %3364 = vmatpush1.bf16.msra.mxu1 %v3363_v5  ;;  %v1076_v50 = vrot.slane %v4025_v21, 4  ;;  %v1081_v21 = vrot.slane %v4076_v42, 4  ;;  %v509_v42 = vld [vmem:[%s5122_s3 + $0x78] sm:$0xff] }
  0x2f   : > { %795 = vmatprep.mubr.f32.mxu0 %v3840_v7  ;;  %3326 = vmatpush1.bf16.msra.mxu0 %v3325_v52 }
  0x30   : > { %3328 = vmatprep.subr.bf16.mxu0 %v3327_v53  ;;  %3365 = vmatprep.subr.bf16.mxu1 %v3841_v14  ;;  %v1078_v52 = vsel %vm1075_vm4, %v1076_v50, %v1077_v51  ;;  %v1079_v53 = vrot.slane %v4055_v33, 4  ;;  %v508_v33 = vld [vmem:[%s5122_s3 + $0x70] sm:$0xff]  ;;  %v1379_v50 = vld [vmem:[%s5124_s5] sm:$0xff] }
  0x31   : > { %v3369_v55 = vpack.c.bf16 %v509_v42, %v508_v33  ;;  %v1383_v33 = vld [vmem:[%s5124_s5 + $0x20] sm:$0xff]  ;;  %v1385_v42 = vld [vmem:[%s5124_s5 + $0x30] sm:$0xff] }
  0x32   : > { %2814 = vmatmul.mubr.msk.f32.gmra.mrb[2].mxu0 %vm579_vm0, %v714_v61  ;;  %3367 = vmatpush1.bf16.msra.mxu1 %v3366_v16  ;;  %v1080_v54 = vsel %vm1075_vm4, %v1077_v51, %v1079_v53  ;;  %v1082_v28 = vsel %vm1075_vm4, %v1079_v53, %v1081_v21  ;;  %v3375_v61 = vpack.c.bf16 %v513_v60, %v512_v59  ;;  %v1381_v51 = vld [vmem:[%s5124_s5 + $0x10] sm:$0xff]  ;;  %v1386_v53 = vld [vmem:[%s5124_s5 + $0x38] sm:$0xff]  ;;  %v1387_v59 = vld [vmem:[%s5124_s5 + $0x40] sm:$0xff] }
  0x33   : > { %801 = vmatprep.mubr.f32.mxu0 %v3840_v7  ;;  %3330 = vmatpush1.bf16.msra.mxu0 %v3329_v63  ;;  %v682_v63 = vlaneseq  ;;  %v3393_v57 = vpack.c.bf16 %v1385_v42, %v1383_v33  ;;  %v1389_v60 = vld [vmem:[%s5124_s5 + $0x50] sm:$0xff] }
  0x34   : > { %3332 = vmatprep.subr.bf16.mxu0 %v3331_v0  ;;  %3368 = vmatprep.subr.bf16.mxu1 %v3841_v14 }
  0x35   : > { %v4259_v0 = vshrl.u32 %v682_v63, 7  ;;  %v3397_v63 = vpack.c.bf16 %v1389_v60, %v1387_v59  ;;  %v2872_v60 = vld [vmem:[%s5124_s5 + $0xf0] sm:$0xff] }
  0x36   : > { %2815 = vmatmul.mubr.msk.f32.gmra.mrb[4].mxu0 %vm579_vm0, %v716_v4  ;;  %3370 = vmatpush1.bf16.msra.mxu1 %v3369_v55  ;;  %v1388_v55 = vld [vmem:[%s5124_s5 + $0x48] sm:$0xff] }
  0x37   : > { %807 = vmatprep.mubr.f32.mxu0 %v3840_v7  ;;  %3371 = vmatprep.subr.bf16.mxu1 %v3841_v14  ;;  %v684_v1 = vsub.s32 0, %v4259_v0  ;;  %v688_v3 = vsub.s32 1, %v4259_v0 }
  0x39   : > { %v685_v4 = vrot.slane %v562_v2, %v684_v1  ;;  %v689_v5 = vrot.slane %v562_v2, %v688_v3 }
  0x3a   : > { %2816 = vmatmul.mubr.msk.f32.gmra.mrb[6].mxu0 %vm579_vm0, %v715_v62  ;;  %3373 = vmatpush1.bf16.msra.mxu1 %v3372_v58  ;;  %v514_v62 = vld [vmem:[%s5122_s3 + $0xa0] sm:$0xff]  ;;  %v3395_v58 = vpack.c.bf16 %v1390_v56, %v1388_v55 }
  0x3b   : > { %911 = vmatprep.mubr.f32.mxu0 %v3840_v7  ;;  %3374 = vmatprep.subr.bf16.mxu1 %v3841_v14 }
  0x3e   : > { %2825 = vmatmul.mubr.msk.f32.vlgmr.msra.gmra.mrb[0].mxu0 %vm579_vm0, %v834_v17  ;;  %3376 = vmatpush1.bf16.msra.mxu1 %v3375_v61  ;;  %v1392_v61 = vld [vmem:[%s5124_s5 + $0x68] sm:$0xff] }
  0x3f   : > { %917 = vmatprep.mubr.f32.mxu0 %v3840_v7  ;;  %3334 = vmatpush1.bf16.msra.mxu0 %v3333_v19 }
  0x40   : > { %3336 = vmatprep.subr.bf16.mxu0 %v3335_v20  ;;  %1249 = vmatprep.subr.mxu1 %v3840_v7 }
  0x42   : > { %2826 = vmatmul.mubr.msk.f32.gmra.mrb[2].mxu0 %vm579_vm0, %v836_v26  ;;  %1250 = vmatpush1.msra.mxu1 %v514_v62  ;;  %v1394_v62 = vld [vmem:[%s5124_s5 + $0x78] sm:$0xff] }
  0x43   : > { %923 = vmatprep.mubr.f32.mxu0 %v3840_v7  ;;  %3338 = vmatpush1.bf16.msra.mxu0 %v3337_v29  ;;  %v3399_v2 = vpack.c.bf16 %v1394_v62, %v1392_v61  ;;  %v2874_v61 = vld [vmem:[%s5124_s5 + $0x100] sm:$0xff] }
  0x44   : > { %3340 = vmatprep.subr.bf16.mxu0 %v3339_v30 }
  0x46   : > { %2827 = vmatmul.mubr.msk.f32.gmra.mrb[4].mxu0 %vm579_vm0, %v838_v31 }
  0x47   : > { %929 = vmatprep.mubr.f32.mxu0 %v3840_v7 }
  0x4a   : > { %2828 = vmatmul.mubr.msk.f32.gmra.mrb[6].mxu0 %vm579_vm0, %v837_v27 }
  0x4b   : > { %1033 = vmatprep.mubr.f32.mxu0 %v3840_v7 }
  0x4e   : > { %2837 = vmatmul.mubr.msk.f32.vlgmr.msra.gmra.mrb[0].mxu0 %vm579_vm0, %v956_v39 }
  0x4f   : > { %1039 = vmatprep.mubr.f32.mxu0 %v3840_v7  ;;  %3342 = vmatpush1.bf16.msra.mxu0 %v3341_v41 }
  0x50   : > { %3344 = vmatprep.subr.bf16.mxu0 %v3343_v43 }
  0x52   : > { %2838 = vmatmul.mubr.msk.f32.gmra.mrb[2].mxu0 %vm579_vm0, %v958_v46 }
  0x53   : > { %1045 = vmatprep.mubr.f32.mxu0 %v3840_v7  ;;  %3346 = vmatpush1.bf16.msra.mxu0 %v3345_v48 }
  0x54   : > { %3487 = vmatprep.subr.bf16.mxu0 %v3841_v14 }
  0x56   : > { %2839 = vmatmul.mubr.msk.f32.gmra.mrb[4].mxu0 %vm579_vm0, %v960_v49  ;;  %v3387_v49 = vpack.c.bf16 %v1382_v45, %v1380_v44  ;;  %v2869_v44 = vld [vmem:[%s5124_s5 + $0xd8] sm:$0xff]  ;;  %v2871_v45 = vld [vmem:[%s5124_s5 + $0xe8] sm:$0xff] }
  0x57   : > { %1051 = vmatprep.mubr.f32.mxu0 %v3840_v7 }
  0x5a   : > { %2840 = vmatmul.mubr.msk.f32.gmra.mrb[6].mxu0 %vm579_vm0, %v959_v47 }
  0x5b   : > { %1155 = vmatprep.mubr.f32.mxu0 %v3840_v7 }
  0x5e   : > { %2849 = vmatmul.mubr.msk.f32.vlgmr.msra.gmra.mrb[0].mxu0 %vm579_vm0, %v1078_v52  ;;  %v1384_v52 = vld [vmem:[%s5124_s5 + $0x28] sm:$0xff] }
  0x5f   : > { %1161 = vmatprep.mubr.f32.mxu0 %v3840_v7 }
  0x62   : > { %2850 = vmatmul.mubr.msk.f32.gmra.mrb[2].mxu0 %vm579_vm0, %v1080_v54  ;;  %v493_v54 = vld [vmem:[%s5123_s4 + $0x8] sm:$0x3f] }
  0x63   : > { %1167 = vmatprep.mubr.f32.mxu0 %v3840_v7 }
  0x66   : > { %2851 = vmatmul.mubr.msk.f32.gmra.mrb[4].mxu0 %vm579_vm0, %v1082_v28  ;;  %v3391_v28 = vpack.c.bf16 %v1386_v53, %v1384_v52  ;;  %v2875_v52 = vld [vmem:[%s5124_s5 + $0x108] sm:$0xff] }
  0x67   : > { %1173 = vmatprep.mubr.f32.mxu0 %v3840_v7 }
  0x6a   : > { %2852 = vmatmul.mubr.msk.f32.gmra.mrb[6].mxu0 %vm579_vm0, %v1081_v21  ;;  %v3389_v21 = vpack.c.bf16 %v1381_v51, %v1379_v50  ;;  %v2870_v50 = vld [vmem:[%s5124_s5 + $0xe0] sm:$0xff]  ;;  %v2873_v51 = vld [vmem:[%s5124_s5 + $0xf8] sm:$0xff] }
  0x6b   : > { %v3415_v59 = vpack.c.bf16 %v2875_v52, %v2873_v51  ;;  %v2909_v51 = vld [vmem:[%s5124_s5 + $0x1f8] sm:$0xff] }
 0x131   : > { %v1157_v6 = vpop.f32.mrb[0].mxu0 }
 0x132   : > { %v3632_v8 = vadd.f32 %v1157_v6, %v685_v4  ;;  %v1159_v9 = vpop.f32.mrb[1].mxu0  ;;  %v1396_v6 = vld [vmem:[%s5124_s5 + $0x88] sm:$0xff] }
 0x133   : > { %v3633_v10 = vadd.f32 %v1159_v9, %v689_v5 }
 0x135   : > { %3744 = vtanh.f32 %v3633_v10  ;;  %v1163_v11 = vpop.f32.mrb[2].mxu0 }
 0x136   : > { %3746 = vtanh.f32 %v3632_v8  ;;  %v3634_v12 = vadd.f32 %v1163_v11, %v685_v4  ;;  %v1165_v13 = vpop.f32.mrb[3].mxu0  ;;  %v1398_v8 = vld [vmem:[%s5124_s5 + $0x98] sm:$0xff]  ;;  %v1395_v11 = vld [vmem:[%s5124_s5 + $0x80] sm:$0xff] }
 0x137   : > { %v3635_v15 = vadd.f32 %v1165_v13, %v689_v5  ;;  %v3403_v10 = vpack.c.bf16 %v1398_v8, %v1396_v6  ;;  %v2879_v6 = vld [vmem:[%s5124_s5 + $0x128] sm:$0xff]  ;;  %v3417_v8 = vpack.c.bf16 %v2874_v61, %v2872_v60  ;;  %v2918_v60 = vld [vmem:[%s5124_s5 + $0x220] sm:$0xff]  ;;  %v2921_v61 = vld [vmem:[%s5124_s5 + $0x238] sm:$0xff] }
 0x139   : > { %3748 = vtanh.f32 %v3635_v15  ;;  %v1169_v16 = vpop.f32.mrb[4].mxu0  ;;  %v1400_v15 = vld [vmem:[%s5124_s5 + $0xa8] sm:$0xf] }
 0x13a   : > { %3750 = vtanh.f32 %v3634_v12  ;;  %v3636_v17 = vadd.f32 %v1169_v16, %v685_v4  ;;  %v1171_v18 = vpop.f32.mrb[5].mxu0  ;;  %v1397_v12 = vld [vmem:[%s5124_s5 + $0x90] sm:$0xff]  ;;  %v2865_v16 = vld [vmem:[%s5124_s5 + $0xb8] sm:$0xff] }
 0x13b   : > { %v3637_v19 = vadd.f32 %v1171_v18, %v689_v5  ;;  %v3405_v13 = vpack.c.bf16 %v1397_v12, %v1395_v11  ;;  %v1399_v18 = vld [vmem:[%s5124_s5 + $0xa0] sm:$0xf]  ;;  %v2881_v12 = vld [vmem:[%s5124_s5 + $0x138] sm:$0xff] }
 0x13c   : > { %v2878_v11 = vld [vmem:[%s5124_s5 + $0x120] sm:$0xff] }
 0x13d   : > { %3752 = vtanh.f32 %v3637_v19  ;;  %v1175_v20 = vpop.f32.mrb[6].mxu0 }
 0x13e   : > { %3754 = vtanh.f32 %v3636_v17  ;;  %v3638_v22 = vadd.f32 %v1175_v20, %v685_v4  ;;  %v1177_v23 = vpop.f32.mrb[7].mxu0  ;;  %v1391_v4 = vld [vmem:[%s5124_s5 + $0x60] sm:$0xff]  ;;  %v2867_v17 = vld [vmem:[%s5124_s5 + $0xc8] sm:$0xff] }
 0x13f   : > { %v3745_v24 = vpop.eup %3744  ;;  %v3639_v25 = vadd.f32 %v1177_v23, %v689_v5  ;;  %v1393_v5 = vld [vmem:[%s5124_s5 + $0x70] sm:$0xff]  ;;  %v3407_v19 = vpack.c.bf16 %v2867_v17, %v2865_v16  ;;  %v516_v20 = vld [vmem:[%s5126_s7] sm:$0xff] }
 0x140   : > { %v3747_v26 = vpop.eup %3746  ;;  %2853 = vmatprep.mubr.msk.f32.mxu1 %vm1196_vm5, %v3745_v24  ;;  %v3401_v9 = vpack.c.bf16 %v1393_v5, %v1391_v4  ;;  %v518_v23 = vld [vmem:[%s5126_s7 + $0x10] sm:$0xff]  ;;  %v2877_v5 = vld [vmem:[%s5124_s5 + $0x118] sm:$0xff] }
 0x141   : > { %3756 = vtanh.f32 %v3639_v25  ;;  %1274 = vmatmul.mubr.f32.vlgmr.msra.gmra.mrb[0].mxu1 %v3747_v26  ;;  %v519_v25 = vld [vmem:[%s5126_s7 + $0x18] sm:$0xff]  ;;  %v2880_v17 = vld [vmem:[%s5124_s5 + $0x130] sm:$0xff] }
 0x142   : > { %3758 = vtanh.f32 %v3638_v22  ;;  %v517_v22 = vld [vmem:[%s5126_s7 + $0x8] sm:$0xff]  ;;  %v3491_v26 = vpack.c.bf16 %v519_v25, %v518_v23  ;;  %v2893_v23 = vld [vmem:[%s5124_s5 + $0x178] sm:$0xff]  ;;  %v2892_v25 = vld [vmem:[%s5124_s5 + $0x170] sm:$0xff] }
 0x143   : > { %v3749_v27 = vpop.eup %3748  ;;  %v3488_v24 = vpack.c.bf16 %v517_v22, %v516_v20  ;;  %v2885_v20 = vld [vmem:[%s5124_s5 + $0x158] sm:$0xf]  ;;  %v2891_v22 = vld [vmem:[%s5124_s5 + $0x168] sm:$0xff] }
 0x144   : > { %v3751_v29 = vpop.eup %3750  ;;  %2854 = vmatprep.mubr.msk.f32.mxu1 %vm1196_vm5, %v3749_v27  ;;  %v520_v27 = vld [vmem:[%s5126_s7 + $0x20] sm:$0xff] }
 0x145   : > { %1279 = vmatmul.mubr.f32.gmra.mrb[2].mxu1 %v3751_v29  ;;  %3489 = vmatpush1.bf16.msra.mxu0 %v3488_v24  ;;  %v521_v29 = vld [vmem:[%s5126_s7 + $0x28] sm:$0xff]  ;;  %v2890_v24 = vld [vmem:[%s5124_s5 + $0x160] sm:$0xff] }
 0x146   : > { %3490 = vmatprep.subr.bf16.mxu0 %v3841_v14 }
 0x147   : > { %v3753_v30 = vpop.eup %3752 }
 0x148   : > { %v3755_v31 = vpop.eup %3754  ;;  %2855 = vmatprep.mubr.msk.f32.mxu1 %vm1196_vm5, %v3753_v30  ;;  %v3494_v30 = vpack.c.bf16 %v521_v29, %v520_v27  ;;  %v2897_v27 = vld [vmem:[%s5124_s5 + $0x198] sm:$0xff]  ;;  %v2884_v29 = vld [vmem:[%s5124_s5 + $0x150] sm:$0xf] }
 0x149   : > { %1284 = vmatmul.mubr.f32.gmra.mrb[4].mxu1 %v3755_v31  ;;  %3492 = vmatpush1.bf16.msra.mxu0 %v3491_v26  ;;  %v522_v31 = vld [vmem:[%s5126_s7 + $0x30] sm:$0xff]  ;;  %v2895_v26 = vld [vmem:[%s5124_s5 + $0x188] sm:$0xff] }
 0x14a   : > { %3493 = vmatprep.subr.bf16.mxu0 %v3841_v14 }
 0x14b   : > { %v3757_v32 = vpop.eup %3756 }
 0x14c   : > { %v3759_v34 = vpop.eup %3758  ;;  %2856 = vmatprep.mubr.msk.f32.mxu1 %vm1196_vm5, %v3757_v32  ;;  %v523_v32 = vld [vmem:[%s5126_s7 + $0x38] sm:$0xff] }
 0x14d   : > { %1289 = vmatmul.mubr.f32.gmra.mrb[6].mxu1 %v3759_v34  ;;  %3495 = vmatpush1.bf16.msra.mxu0 %v3494_v30  ;;  %v3497_v34 = vpack.c.bf16 %v523_v32, %v522_v31  ;;  %v3427_v30 = vpack.c.bf16 %v2893_v23, %v2891_v22  ;;  %v3429_v31 = vpack.c.bf16 %v2892_v25, %v2890_v24  ;;  %v2928_v23 = vld [vmem:[%s5124_s5 + $0x270] sm:$0xff]  ;;  %v2930_v24 = vld [vmem:[%s5124_s5 + $0x280] sm:$0xff]  ;;  %v2933_v25 = vld [vmem:[%s5124_s5 + $0x298] sm:$0xff] }
 0x14e   : > { %3124 = vmatprep.mubr.msk.f32.mxu1 %vm1294_vm6, %v492_v35  ;;  %3496 = vmatprep.subr.bf16.mxu0 %v3841_v14  ;;  %v524_v35 = vld [vmem:[%s5126_s7 + $0x40] sm:$0xff]  ;;  %v3431_v32 = vpack.c.bf16 %v2897_v27, %v2895_v26  ;;  %v3461_v26 = vpack.c.bf16 %v2930_v24, %v2928_v23 }
 0x151   : > { %3498 = vmatpush1.bf16.msra.mxu0 %v3497_v34  ;;  %v2894_v34 = vld [vmem:[%s5124_s5 + $0x180] sm:$0xff] }
 0x152   : > { %3499 = vmatprep.subr.bf16.mxu0 %v3841_v14 }
 0x214   : > { %v1275_v36 = vpop.f32.mrb[0].mxu1 }
 0x215   : > { %v1277_v37 = vpop.f32.mrb[1].mxu1 }
 0x218   : > { %v1280_v38 = vpop.f32.mrb[2].mxu1 }
 0x219   : > { %v3377_v39 = vpack.c.bf16 %v1280_v38, %v1275_v36  ;;  %v1282_v40 = vpop.f32.mrb[3].mxu1  ;;  %v525_v36 = vld [vmem:[%s5126_s7 + $0x48] sm:$0xff]  ;;  %v526_v38 = vld [vmem:[%s5126_s7 + $0x50] sm:$0xff] }
 0x21a   : > { %v3500_v37 = vpack.c.bf16 %v525_v36, %v524_v35  ;;  %v2896_v35 = vld [vmem:[%s5124_s5 + $0x190] sm:$0xff]  ;;  %v2899_v36 = vld [vmem:[%s5124_s5 + $0x1a8] sm:$0xff] }
 0x21b   : > { %3378 = vmatprep.subr.bf16.mxu1 %v3377_v39 }
 0x21c   : > { %v1285_v41 = vpop.f32.mrb[4].mxu1  ;;  %3380 = vmatpush3.bf16.msra.mxu1 %v3377_v39  ;;  %v527_v39 = vld [vmem:[%s5126_s7 + $0x58] sm:$0xff]  ;;  %3501 = vmatpush1.bf16.msra.mxu0 %v3500_v37 }
 0x21d   : > { %v1287_v43 = vpop.f32.mrb[5].mxu1  ;;  %v3503_v40 = vpack.c.bf16 %v527_v39, %v526_v38  ;;  %3502 = vmatprep.subr.bf16.mxu0 %v3841_v14  ;;  %v2901_v37 = vld [vmem:[%s5124_s5 + $0x1b8] sm:$0xff]  ;;  %v3433_v38 = vpack.c.bf16 %v2896_v35, %v2894_v34  ;;  %v2943_v34 = vld [vmem:[%s5124_s5 + $0x2c8] sm:$0xff] }
 0x21e   : > { %v2866_v43 = vld [vmem:[%s5124_s5 + $0xc0] sm:$0xff]  ;;  %v3435_v39 = vpack.c.bf16 %v2901_v37, %v2899_v36  ;;  %v2945_v35 = vld [vmem:[%s5124_s5 + $0x2d8] sm:$0xff]  ;;  %v2944_v37 = vld [vmem:[%s5124_s5 + $0x2d0] sm:$0xff] }
 0x21f   : > { %v2942_v36 = vld [vmem:[%s5124_s5 + $0x2c0] sm:$0xff] }
 0x220   : > { %v1290_v46 = vpop.f32.mrb[6].mxu1  ;;  %3504 = vmatpush1.bf16.msra.mxu0 %v3503_v40  ;;  %v2898_v40 = vld [vmem:[%s5124_s5 + $0x1a0] sm:$0xff] }
 0x221   : > { %v3381_v47 = vpack.c.bf16 %v1290_v46, %v1285_v41  ;;  %v1292_v48 = vpop.f32.mrb[7].mxu1  ;;  %3505 = vmatprep.subr.bf16.mxu0 %v3841_v14  ;;  %v2864_v41 = vld [vmem:[%s5124_s5 + $0xb0] sm:$0xff] }
 0x222   : > { %v3409_v46 = vpack.c.bf16 %v2866_v43, %v2864_v41  ;;  %v2900_v41 = vld [vmem:[%s5124_s5 + $0x1b0] sm:$0xff]  ;;  %v2903_v43 = vld [vmem:[%s5124_s5 + $0x1c8] sm:$0xff] }
 0x223   : > { %3383 = vmatprep.subr.msk.bf16.mxu1 %vm3382_vm8, %v3381_v47 }
 0x224   : > { %3386 = vmatpush3.bf16.msk.msra.mxu1 %vm3382_vm8, %v3381_v47  ;;  %v2868_v47 = vld [vmem:[%s5124_s5 + $0xd0] sm:$0xff] }
 0x225   : > { %3388 = vmatprep.subr.bf16.mxu1 %v3387_v49  ;;  %v3411_v49 = vpack.c.bf16 %v2871_v45, %v2869_v44  ;;  %v2905_v44 = vld [vmem:[%s5124_s5 + $0x1d8] sm:$0xff]  ;;  %v3437_v45 = vpack.c.bf16 %v2900_v41, %v2898_v40  ;;  %v2936_v40 = vld [vmem:[%s5124_s5 + $0x2b0] sm:$0xf]  ;;  %v3467_v41 = vpack.c.bf16 %v2945_v35, %v2943_v34  ;;  %v2137_v35 = vld [vmem:[%s5128_s9] sm:$0xff] }
 0x227   : > { %3125 = vmatmul.mubr.msk.f32.vlgmr.msra.gmra.mrb[8].mxu1 %vm1294_vm6, %v493_v54 }
 0x228   : > { %3390 = vmatpush1.bf16.msra.mxu1 %v3389_v21  ;;  %1478 = vmatprep.mubr.f32.mxu1 %v3840_v7 }
 0x229   : > { %3392 = vmatprep.subr.bf16.mxu1 %v3391_v28 }
 0x22c   : > { %3394 = vmatpush1.bf16.msra.mxu1 %v3393_v57 }
 0x22d   : > { %3396 = vmatprep.subr.bf16.mxu1 %v3395_v58  ;;  %v3413_v58 = vpack.c.bf16 %v2870_v50, %v2868_v47  ;;  %v2902_v47 = vld [vmem:[%s5124_s5 + $0x1c0] sm:$0xff]  ;;  %v2907_v50 = vld [vmem:[%s5124_s5 + $0x1e8] sm:$0xff] }
 0x230   : > { %3398 = vmatpush1.bf16.msra.mxu1 %v3397_v63 }
 0x231   : > { %3400 = vmatprep.subr.bf16.mxu1 %v3399_v2 }
 0x234   : > { %3402 = vmatpush1.bf16.msra.mxu1 %v3401_v9  ;;  %v3419_v9 = vpack.c.bf16 %v2879_v6, %v2877_v5  ;;  %v2910_v5 = vld [vmem:[%s5124_s5 + $0x200] sm:$0xf] }
 0x235   : > { %3404 = vmatprep.subr.bf16.mxu1 %v3403_v10  ;;  %v2876_v10 = vld [vmem:[%s5124_s5 + $0x110] sm:$0xff] }
 0x238   : > { %3406 = vmatpush1.bf16.msra.mxu1 %v3405_v13  ;;  %v2883_v13 = vld [vmem:[%s5124_s5 + $0x148] sm:$0xff] }
 0x239   : > { %2860 = vmatprep.subr.msk.mxu1 %vm1075_vm4, %v1400_v15  ;;  %v3421_v15 = vpack.c.bf16 %v2878_v11, %v2876_v10  ;;  %v3423_v16 = vpack.c.bf16 %v2883_v13, %v2881_v12  ;;  %v2920_v10 = vld [vmem:[%s5124_s5 + $0x230] sm:$0xff]  ;;  %v2922_v11 = vld [vmem:[%s5124_s5 + $0x240] sm:$0xff]  ;;  %v2925_v12 = vld [vmem:[%s5124_s5 + $0x258] sm:$0xff] }
 0x23a   : > { %v2927_v13 = vld [vmem:[%s5124_s5 + $0x268] sm:$0xff] }
 0x23c   : > { %2861 = vmatpush1.msk.msra.mxu1 %vm1075_vm4, %v1399_v18  ;;  %v2882_v18 = vld [vmem:[%s5124_s5 + $0x140] sm:$0xff] }
 0x23d   : > { %3408 = vmatprep.subr.bf16.mxu1 %v3407_v19  ;;  %v3425_v19 = vpack.c.bf16 %v2882_v18, %v2880_v17  ;;  %v2924_v17 = vld [vmem:[%s5124_s5 + $0x250] sm:$0xff]  ;;  %v2926_v18 = vld [vmem:[%s5124_s5 + $0x260] sm:$0xff] }
 0x2fa   : > { %v4416_v48 = vpop.f32.mrb[8].mxu1 }
 0x2fb   : > { %v1530_v53 = vrot.slane %v4416_v48, 1  ;;  %v1647_v54 = vrot.slane %v4416_v48, 2  ;;  %v1764_v21 = vrot.slane %v4416_v48, 3  ;;  %v1881_v28 = vrot.slane %v4416_v48, 4  ;;  %v1370_v33 = vpop.f32.mrb[9].mxu1 }
 0x2fc   : > { %v1529_v42 = vrot.slane %v1370_v33, 1  ;;  %v1646_v55 = vrot.slane %v1370_v33, 2  ;;  %v1763_v56 = vrot.slane %v1370_v33, 3  ;;  %v1880_v57 = vrot.slane %v1370_v33, 4  ;;  %2862 = vmatmul.mubr.msk.f32.vlgmr.msra.gmra.mrb[10].mxu1 %vm1401_vm9, %v1370_v33  ;;  %v2906_v33 = vld [vmem:[%s5124_s5 + $0x1e0] sm:$0xff] }
 0x2fd   : > { %3410 = vmatpush1.bf16.msra.mxu1 %v3409_v46  ;;  %1484 = vmatprep.mubr.f32.mxu1 %v3840_v7  ;;  %v3439_v46 = vpack.c.bf16 %v2905_v44, %v2903_v43  ;;  %v3469_v43 = vpack.c.bf16 %v2944_v37, %v2942_v36  ;;  %v2138_v36 = vld [vmem:[%s5128_s9 + $0x8] sm:$0xff] }
 0x2fe   : > { %3412 = vmatprep.subr.bf16.mxu1 %v3411_v49  ;;  %v1531_v62 = vsel %vm709_vm1, %v1529_v42, %v1530_v53  ;;  %v4445_v63 = vsel %vm831_vm2, %v1646_v55, %v1647_v54  ;;  %v4450_v2 = vsel %vm953_vm3, %v1763_v56, %v1764_v21  ;;  %v4455_v4 = vsel %vm1075_vm4, %v1880_v57, %v1881_v28  ;;  %v2904_v49 = vld [vmem:[%s5124_s5 + $0x1d0] sm:$0xff]  ;;  %v2911_v56 = vld [vmem:[%s5124_s5 + $0x208] sm:$0xf]  ;;  %v2917_v57 = vld [vmem:[%s5124_s5 + $0x218] sm:$0xff] }
 0x2ff   : > { %v3441_v52 = vpack.c.bf16 %v2904_v49, %v2902_v47  ;;  %v2908_v42 = vld [vmem:[%s5124_s5 + $0x1f0] sm:$0xff]  ;;  %v2951_v47 = vld [vmem:[%s5124_s5 + $0x308] sm:$0xff]  ;;  %v2953_v49 = vld [vmem:[%s5124_s5 + $0x318] sm:$0xff] }
 0x300   : > { %2863 = vmatmul.mubr.msk.f32.gmra.mrb[12].mxu1 %vm1401_vm9, %v4416_v48  ;;  %v3445_v55 = vpack.c.bf16 %v2908_v42, %v2906_v33  ;;  %v2955_v33 = vld [vmem:[%s5124_s5 + $0x328] sm:$0xff]  ;;  %v531_v48 = vld [vmem:[%s5126_s7 + $0x78] sm:$0xff] }
 0x301   : > { %3414 = vmatpush1.bf16.msra.mxu1 %v3413_v58  ;;  %1606 = vmatprep.mubr.f32.mxu1 %v3840_v7  ;;  %v2919_v58 = vld [vmem:[%s5124_s5 + $0x228] sm:$0xff] }
 0x302   : > { %3416 = vmatprep.subr.bf16.mxu1 %v3415_v59  ;;  %v2916_v59 = vld [vmem:[%s5124_s5 + $0x210] sm:$0xff]  ;;  %v3447_v6 = vpack.c.bf16 %v2919_v58, %v2917_v57  ;;  %v2959_v58 = vld [vmem:[%s5124_s5 + $0x348] sm:$0xff] }
 0x303   : > { %v2956_v57 = vld [vmem:[%s5124_s5 + $0x330] sm:$0xff] }
 0x305   : > { %3418 = vmatpush1.bf16.msra.mxu1 %v3417_v8  ;;  %v3449_v8 = vpack.c.bf16 %v2918_v60, %v2916_v59 }
 0x306   : > { %3420 = vmatprep.subr.bf16.mxu1 %v3419_v9 }
 0x309   : > { %3422 = vmatpush1.bf16.msra.mxu1 %v3421_v15  ;;  %v3453_v15 = vpack.c.bf16 %v2922_v11, %v2920_v10  ;;  %v529_v10 = vld [vmem:[%s5126_s7 + $0x68] sm:$0xff] }
 0x30a   : > { %3424 = vmatprep.subr.bf16.mxu1 %v3423_v16  ;;  %v3455_v16 = vpack.c.bf16 %v2927_v13, %v2925_v12  ;;  %v532_v12 = vld [vmem:[%s5126_s7 + $0x80] sm:$0xff]  ;;  %v533_v13 = vld [vmem:[%s5126_s7 + $0x88] sm:$0xff] }
 0x30d   : > { %3426 = vmatpush1.bf16.msra.mxu1 %v3425_v19  ;;  %v2929_v19 = vld [vmem:[%s5124_s5 + $0x278] sm:$0xff] }
 0x30e   : > { %2886 = vmatprep.subr.msk.mxu1 %vm1075_vm4, %v2885_v20  ;;  %v3457_v20 = vpack.c.bf16 %v2926_v18, %v2924_v17  ;;  %v535_v17 = vld [vmem:[%s5126_s7 + $0x98] sm:$0xff] }
 0x311   : > { %2887 = vmatpush1.msk.msra.mxu1 %vm1075_vm4, %v2884_v29  ;;  %v2932_v29 = vld [vmem:[%s5124_s5 + $0x290] sm:$0xff] }
 0x312   : > { %2888 = vmatmul.mubr.msk.f32.vlgmr.msra.gmra.mrb[10].mxu1 %vm1401_vm9, %v1531_v62  ;;  %3428 = vmatprep.subr.bf16.mxu1 %v3427_v30  ;;  %v2923_v62 = vld [vmem:[%s5124_s5 + $0x248] sm:$0xff]  ;;  %v2934_v30 = vld [vmem:[%s5124_s5 + $0x2a0] sm:$0xff] }
 0x313   : > { %3430 = vmatpush1.bf16.msra.mxu1 %v3429_v31  ;;  %1612 = vmatprep.mubr.f32.mxu1 %v3840_v7  ;;  %v3451_v9 = vpack.c.bf16 %v2923_v62, %v2921_v61  ;;  %v3465_v31 = vpack.c.bf16 %v2934_v30, %v2932_v29  ;;  %v2958_v61 = vld [vmem:[%s5124_s5 + $0x340] sm:$0xff]  ;;  %v2960_v62 = vld [vmem:[%s5124_s5 + $0x350] sm:$0xff] }
 0x314   : > { %3432 = vmatprep.subr.bf16.mxu1 %v3431_v32  ;;  %v2937_v32 = vld [vmem:[%s5124_s5 + $0x2b8] sm:$0xf] }
 0x316   : > { %2889 = vmatmul.mubr.msk.f32.gmra.mrb[12].mxu1 %vm1401_vm9, %v1530_v53  ;;  %v3443_v53 = vpack.c.bf16 %v2909_v51, %v2907_v50  ;;  %v3475_v51 = vpack.c.bf16 %v2953_v49, %v2951_v47  ;;  %v2143_v49 = vld [vmem:[%s5128_s9 + $0x30] sm:$0xff] }
 0x317   : > { %3434 = vmatpush1.bf16.msra.mxu1 %v3433_v38  ;;  %1723 = vmatprep.mubr.f32.mxu1 %v3840_v7  ;;  %v2947_v38 = vld [vmem:[%s5124_s5 + $0x2e8] sm:$0xff] }
 0x318   : > { %3436 = vmatprep.subr.bf16.mxu1 %v3435_v39  ;;  %v2949_v39 = vld [vmem:[%s5124_s5 + $0x2f8] sm:$0xff] }
 0x319   : > { %v3471_v44 = vpack.c.bf16 %v2949_v39, %v2947_v38  ;;  %v515_v39 = vld [vmem:[%s5127_s8] sm:$0x1f] }
 0x31b   : > { %3438 = vmatpush1.bf16.msra.mxu1 %v3437_v45  ;;  %v2946_v45 = vld [vmem:[%s5124_s5 + $0x2e0] sm:$0xff] }
 0x31c   : > { %3440 = vmatprep.subr.bf16.mxu1 %v3439_v46  ;;  %v2948_v46 = vld [vmem:[%s5124_s5 + $0x2f0] sm:$0xff] }
 0x31d   : > { %v3473_v50 = vpack.c.bf16 %v2948_v46, %v2946_v45  ;;  %v2141_v45 = vld [vmem:[%s5128_s9 + $0x20] sm:$0xff]  ;;  %v2142_v46 = vld [vmem:[%s5128_s9 + $0x28] sm:$0xff] }
 0x31e   : > { %v3528_v47 = vpack.c.bf16 %v2142_v46, %v2141_v45  ;;  %v3000_v45 = vld [vmem:[%s5128_s9 + $0x118] sm:$0xff] }
 0x31f   : > { %3442 = vmatpush1.bf16.msra.mxu1 %v3441_v52  ;;  %v2950_v52 = vld [vmem:[%s5124_s5 + $0x300] sm:$0xff] }
 0x320   : > { %3444 = vmatprep.subr.bf16.mxu1 %v3443_v53  ;;  %v2952_v53 = vld [vmem:[%s5124_s5 + $0x310] sm:$0xff] }
 0x321   : > { %v3477_v42 = vpack.c.bf16 %v2952_v53, %v2950_v52  ;;  %v2145_v52 = vld [vmem:[%s5128_s9 + $0x40] sm:$0xff]  ;;  %v2146_v53 = vld [vmem:[%s5128_s9 + $0x48] sm:$0xff] }
 0x323   : > { %3446 = vmatpush1.bf16.msra.mxu1 %v3445_v55 }
 0x324   : > { %2912 = vmatprep.subr.msk.mxu1 %vm1075_vm4, %v2911_v56  ;;  %v2954_v56 = vld [vmem:[%s5124_s5 + $0x320] sm:$0xff] }
 0x325   : > { %v3481_v59 = vpack.c.bf16 %v2956_v57, %v2954_v56  ;;  %v539_v57 = vld [vmem:[%s5130_s11 + $0x18] sm:$0xff] }
 0x327   : > { %2913 = vmatpush1.msk.msra.mxu1 %vm1075_vm4, %v2910_v5  ;;  %v3485_v5 = vpack.c.bf16 %v2960_v62, %v2958_v61  ;;  %v542_v61 = vld [vmem:[%s5130_s11 + $0x30] sm:$0xff]  ;;  %v543_v62 = vld [vmem:[%s5130_s11 + $0x38] sm:$0xff] }
 0x328   : > { %2914 = vmatmul.mubr.msk.f32.vlgmr.msra.gmra.mrb[10].mxu1 %vm1401_vm9, %v4445_v63  ;;  %3448 = vmatprep.subr.bf16.mxu1 %v3447_v6  ;;  %v2931_v63 = vld [vmem:[%s5124_s5 + $0x288] sm:$0xff] }
 0x329   : > { %3450 = vmatpush1.bf16.msra.mxu1 %v3449_v8  ;;  %1729 = vmatprep.mubr.f32.mxu1 %v3840_v7  ;;  %v3459_v22 = vpack.c.bf16 %v2931_v63, %v2929_v19  ;;  %v2963_v6 = vld [vmem:[%s5124_s5 + $0x368] sm:$0xf]  ;;  %v2962_v8 = vld [vmem:[%s5124_s5 + $0x360] sm:$0xf] }
 0x32a   : > { %3452 = vmatprep.subr.bf16.mxu1 %v3451_v9  ;;  %v528_v9 = vld [vmem:[%s5126_s7 + $0x60] sm:$0xff] }
 0x32b   : > { %v3506_v11 = vpack.c.bf16 %v529_v10, %v528_v9  ;;  %v563_v19 = vld [vmem:[%s5125_s6] sm:$0x3] }
 0x32c   : > { %2915 = vmatmul.mubr.msk.f32.gmra.mrb[12].mxu1 %vm1401_vm9, %v1647_v54  ;;  %v2935_v54 = vld [vmem:[%s5124_s5 + $0x2a8] sm:$0xff]  ;;  %v1495_v63 = vrot.slane %v563_v19, %v684_v1  ;;  %v2975_v10 = vld [vmem:[%s5128_s9 + $0x60] sm:$0xff] }
 0x32d   : > { %3454 = vmatpush1.bf16.msra.mxu1 %v3453_v15  ;;  %1840 = vmatprep.mubr.f32.mxu1 %v3840_v7  ;;  %v3463_v27 = vpack.c.bf16 %v2935_v54, %v2933_v25  ;;  %v3512_v15 = vpack.c.bf16 %v533_v13, %v532_v12  ;;  %v2977_v12 = vld [vmem:[%s5128_s9 + $0x70] sm:$0xff]  ;;  %v2978_v13 = vld [vmem:[%s5128_s9 + $0x78] sm:$0xff] }
 0x32e   : > { %3456 = vmatprep.subr.bf16.mxu1 %v3455_v16  ;;  %3507 = vmatpush1.bf16.msra.mxu0 %v3506_v11  ;;  %v534_v16 = vld [vmem:[%s5126_s7 + $0x90] sm:$0xff]  ;;  %v2976_v11 = vld [vmem:[%s5128_s9 + $0x68] sm:$0xff] }
 0x32f   : > { %3508 = vmatprep.subr.bf16.mxu0 %v3841_v14  ;;  %v3515_v18 = vpack.c.bf16 %v535_v17, %v534_v16  ;;  %v2979_v16 = vld [vmem:[%s5128_s9 + $0x80] sm:$0xff]  ;;  %v2980_v17 = vld [vmem:[%s5128_s9 + $0x88] sm:$0xff] }
 0x331   : > { %3458 = vmatpush1.bf16.msra.mxu1 %v3457_v20  ;;  %v1499_v20 = vrot.slane %v563_v19, %v688_v3  ;;  %v2981_v19 = vld [vmem:[%s5128_s9 + $0x90] sm:$0xff] }
 0x332   : > { %3460 = vmatprep.subr.bf16.mxu1 %v3459_v22 }
 0x335   : > { %3462 = vmatpush1.bf16.msra.mxu1 %v3461_v26 }
 0x336   : > { %3464 = vmatprep.subr.bf16.mxu1 %v3463_v27 }
 0x339   : > { %3466 = vmatpush1.bf16.msra.mxu1 %v3465_v31 }
 0x33a   : > { %2938 = vmatprep.subr.msk.mxu1 %vm1075_vm4, %v2937_v32 }
 0x33d   : > { %2939 = vmatpush1.msk.msra.mxu1 %vm1075_vm4, %v2936_v40  ;;  %v3522_v40 = vpack.c.bf16 %v2138_v36, %v2137_v35  ;;  %v2995_v36 = vld [vmem:[%s5128_s9 + $0xf0] sm:$0xff] }
 0x33e   : > { %2940 = vmatmul.mubr.msk.f32.vlgmr.msra.gmra.mrb[10].mxu1 %vm1401_vm9, %v4450_v2  ;;  %3468 = vmatprep.subr.bf16.mxu1 %v3467_v41  ;;  %v2957_v2 = vld [vmem:[%s5124_s5 + $0x338] sm:$0xff]  ;;  %v2139_v41 = vld [vmem:[%s5128_s9 + $0x10] sm:$0xff] }
 0x33f   : > { %3470 = vmatpush1.bf16.msra.mxu1 %v3469_v43  ;;  %1846 = vmatprep.mubr.f32.mxu1 %v3840_v7  ;;  %v3479_v55 = vpack.c.bf16 %v2957_v2, %v2955_v33  ;;  %v2140_v43 = vld [vmem:[%s5128_s9 + $0x18] sm:$0xff]  ;;  %v3534_v33 = vpack.c.bf16 %v2146_v53, %v2145_v52  ;;  %v536_v2 = vld [vmem:[%s5130_s11] sm:$0xff] }
 0x340   : > { %3472 = vmatprep.subr.bf16.mxu1 %v3471_v44  ;;  %v3525_v44 = vpack.c.bf16 %v2140_v43, %v2139_v41  ;;  %v2998_v41 = vld [vmem:[%s5128_s9 + $0x108] sm:$0xff]  ;;  %v3004_v52 = vld [vmem:[%s5128_s9 + $0x138] sm:$0xff] }
 0x342   : > { %2941 = vmatmul.mubr.msk.f32.gmra.mrb[12].mxu1 %vm1401_vm9, %v1764_v21  ;;  %v2961_v21 = vld [vmem:[%s5124_s5 + $0x358] sm:$0xff] }
 0x343   : > { %3474 = vmatpush1.bf16.msra.mxu1 %v3473_v50  ;;  %1957 = vmatprep.mubr.f32.mxu1 %v3840_v7  ;;  %v3483_v60 = vpack.c.bf16 %v2961_v21, %v2959_v58  ;;  %v2144_v50 = vld [vmem:[%s5128_s9 + $0x38] sm:$0xff]  ;;  %v540_v21 = vld [vmem:[%s5130_s11 + $0x20] sm:$0xff] }
 0x344   : > { %3476 = vmatprep.subr.bf16.mxu1 %v3475_v51  ;;  %v3531_v51 = vpack.c.bf16 %v2144_v50, %v2143_v49  ;;  %v3002_v49 = vld [vmem:[%s5128_s9 + $0x128] sm:$0xff] }
 0x347   : > { %3478 = vmatpush1.bf16.msra.mxu1 %v3477_v42  ;;  %v537_v42 = vld [vmem:[%s5130_s11 + $0x8] sm:$0xff] }
 0x348   : > { %3480 = vmatprep.subr.bf16.mxu1 %v3479_v55  ;;  %v538_v55 = vld [vmem:[%s5130_s11 + $0x10] sm:$0xff]  ;;  %v3597_v56 = vpack.c.bf16 %v537_v42, %v536_v2  ;;  %v3007_v2 = vld [vmem:[%s5128_s9 + $0x148] sm:$0xff] }
 0x349   : > { %v3600_v58 = vpack.c.bf16 %v539_v57, %v538_v55  ;;  %v3009_v57 = vld [vmem:[%s5128_s9 + $0x158] sm:$0xff] }
 0x34b   : > { %3482 = vmatpush1.bf16.msra.mxu1 %v3481_v59  ;;  %v541_v59 = vld [vmem:[%s5130_s11 + $0x28] sm:$0xff] }
 0x34c   : > { %3484 = vmatprep.subr.bf16.mxu1 %v3483_v60  ;;  %v3603_v60 = vpack.c.bf16 %v541_v59, %v540_v21  ;;  %v3010_v21 = vld [vmem:[%s5128_s9 + $0x160] sm:$0xff]  ;;  %v3011_v59 = vld [vmem:[%s5128_s9 + $0x168] sm:$0xff] }
 0x34f   : > { %3486 = vmatpush1.bf16.msra.mxu1 %v3485_v5  ;;  %v3606_v5 = vpack.c.bf16 %v543_v62, %v542_v61  ;;  %v3012_v61 = vld [vmem:[%s5128_s9 + $0x170] sm:$0xff]  ;;  %v3013_v62 = vld [vmem:[%s5128_s9 + $0x178] sm:$0xff] }
 0x350   : > { %2964 = vmatprep.subr.msk.mxu1 %vm1075_vm4, %v2963_v6  ;;  %v2973_v6 = vld [vmem:[%s5128_s9 + $0x50] sm:$0xff] }
 0x353   : > { %2965 = vmatpush1.msk.msra.mxu1 %vm1075_vm4, %v2962_v8  ;;  %v2974_v8 = vld [vmem:[%s5128_s9 + $0x58] sm:$0xff] }
 0x354   : > { %2966 = vmatmul.mubr.msk.f32.vlgmr.msra.gmra.mrb[10].mxu1 %vm1401_vm9, %v4455_v4  ;;  %3596 = vmatprep.subr.bf16.mxu1 %v3841_v14  ;;  %v530_v4 = vld [vmem:[%s5126_s7 + $0x70] sm:$0xff]  ;;  %v3537_v9 = vpack.c.bf16 %v2974_v8, %v2973_v6  ;;  %v3014_v6 = vld [vmem:[%s5128_s9 + $0x180] sm:$0xff]  ;;  %v3015_v8 = vld [vmem:[%s5128_s9 + $0x188] sm:$0xff] }
 0x355   : > { %1963 = vmatprep.mubr.f32.mxu1 %v3840_v7  ;;  %3598 = vmatpush3.bf16.msra.mxu1 %v3597_v56  ;;  %v3008_v56 = vld [vmem:[%s5128_s9 + $0x150] sm:$0xff] }
 0x356   : > { %3599 = vmatprep.subr.bf16.mxu1 %v3841_v14 }
 0x358   : > { %2967 = vmatmul.mubr.msk.f32.gmra.mrb[12].mxu1 %vm1401_vm9, %v1881_v28  ;;  %v3509_v28 = vpack.c.bf16 %v531_v48, %v530_v4 }
 0x359   : > { %3279 = vmatprep.mubr.msk.f32.mxu1 %vm3843_vm10, %v3840_v7  ;;  %3601 = vmatpush3.bf16.msra.mxu1 %v3600_v58  ;;  %v3585_v58 = vpack.c.bf16 %v3009_v57, %v3008_v56 }
 0x35a   : > { %3510 = vmatpush1.bf16.msra.mxu0 %v3509_v28  ;;  %3602 = vmatprep.subr.bf16.mxu1 %v3841_v14  ;;  %v3540_v28 = vpack.c.bf16 %v2976_v11, %v2975_v10  ;;  %v544_v11 = vld [vmem:[%s5130_s11 + $0x40] sm:$0xff] }
 0x35b   : > { %3511 = vmatprep.subr.bf16.mxu0 %v3841_v14 }
 0x35d   : > { %3604 = vmatpush3.bf16.msra.mxu1 %v3603_v60  ;;  %v3588_v60 = vpack.c.bf16 %v3011_v59, %v3010_v21 }
 0x35e   : > { %3513 = vmatpush1.bf16.msra.mxu0 %v3512_v15  ;;  %3605 = vmatprep.subr.bf16.mxu1 %v3841_v14  ;;  %v3543_v15 = vpack.c.bf16 %v2978_v13, %v2977_v12  ;;  %v546_v12 = vld [vmem:[%s5130_s11 + $0x50] sm:$0xff] }
 0x35f   : > { %3514 = vmatprep.subr.bf16.mxu0 %v3841_v14 }
 0x361   : > { %3607 = vmatpush3.bf16.msra.mxu1 %v3606_v5  ;;  %v3591_v5 = vpack.c.bf16 %v3013_v62, %v3012_v61 }
 0x362   : > { %3516 = vmatpush1.bf16.msra.mxu0 %v3515_v18  ;;  %3608 = vmatprep.subr.bf16.mxu1 %v3841_v14  ;;  %v3546_v18 = vpack.c.bf16 %v2980_v17, %v2979_v16  ;;  %v549_v16 = vld [vmem:[%s5130_s11 + $0x68] sm:$0xff] }
 0x363   : > { %3517 = vmatprep.subr.bf16.mxu0 %v3841_v14 }
 0x427   : > { %v1959_v22 = vpop.f32.mrb[10].mxu1 }
 0x428   : > { %v3640_v23 = vadd.f32 %v1959_v22, %v1495_v63  ;;  %v1961_v24 = vpop.f32.mrb[11].mxu1  ;;  %v2984_v22 = vld [vmem:[%s5128_s9 + $0xa0] sm:$0xff] }
 0x429   : > { %v3641_v25 = vadd.f32 %v1961_v24, %v1499_v20 }
 0x42b   : > { %3760 = vtanh.f32 %v3641_v25  ;;  %v1965_v54 = vpop.f32.mrb[12].mxu1 }
 0x42c   : > { %3762 = vtanh.f32 %v3640_v23  ;;  %v3642_v26 = vadd.f32 %v1965_v54, %v1495_v63  ;;  %v1967_v27 = vpop.f32.mrb[13].mxu1  ;;  %v2982_v63 = vld [vmem:[%s5128_s9 + $0x98] sm:$0xff]  ;;  %v2985_v23 = vld [vmem:[%s5128_s9 + $0xa8] sm:$0xff]  ;;  %v2986_v54 = vld [vmem:[%s5128_s9 + $0xb0] sm:$0xff] }
 0x42d   : > { %v3643_v29 = vadd.f32 %v1967_v27, %v1499_v20  ;;  %v3549_v20 = vpack.c.bf16 %v2982_v63, %v2981_v19  ;;  %v3552_v24 = vpack.c.bf16 %v2985_v23, %v2984_v22  ;;  %v564_v19 = vld [vmem:[%s5129_s10] sm:$0x1] }
 0x42e   : > { %v551_v23 = vld [vmem:[%s5132_s13] sm:$0xff] }
 0x42f   : > { %3764 = vtanh.f32 %v3643_v29  ;;  %v2988_v29 = vld [vmem:[%s5128_s9 + $0xc0] sm:$0xff] }
 0x430   : > { %3766 = vtanh.f32 %v3642_v26  ;;  %v2987_v26 = vld [vmem:[%s5128_s9 + $0xb8] sm:$0xff] }
 0x431   : > { %v3555_v27 = vpack.c.bf16 %v2987_v26, %v2986_v54  ;;  %v553_v54 = vld [vmem:[%s5132_s13 + $0x10] sm:$0xff]  ;;  %v554_v26 = vld [vmem:[%s5132_s13 + $0x18] sm:$0xff] }
 0x435   : > { %v3761_v30 = vpop.eup %3760 }
 0x436   : > { %v3763_v31 = vpop.eup %3762  ;;  %2968 = vmatprep.mubr.msk.f32.mxu0 %vm579_vm0, %v3761_v30  ;;  %v2989_v30 = vld [vmem:[%s5128_s9 + $0xc8] sm:$0xff] }
 0x437   : > { %2049 = vmatmul.mubr.f32.vlgmr.msra.gmra.mrb[8].mxu0 %v3763_v31  ;;  %v3558_v31 = vpack.c.bf16 %v2989_v30, %v2988_v29  ;;  %v3621_v29 = vpack.c.bf16 %v554_v26, %v553_v54  ;;  %v555_v30 = vld [vmem:[%s5132_s13 + $0x20] sm:$0xff] }
 0x439   : > { %v3765_v1 = vpop.eup %3764 }
 0x43a   : > { %v3767_v0 = vpop.eup %3766  ;;  %2969 = vmatprep.mubr.msk.f32.mxu0 %vm579_vm0, %v3765_v1  ;;  %v2990_v1 = vld [vmem:[%s5128_s9 + $0xd0] sm:$0xff]  ;;  %vm2714_vm0 = vcmask 73728  }
 0x43b   : > { %2054 = vmatmul.mubr.f32.gmra.mrb[10].mxu0 %v3767_v0  ;;  %v2991_v0 = vld [vmem:[%s5128_s9 + $0xd8] sm:$0xff] }
 0x43c   : > { %3131 = vmatprep.mubr.msk.f32.mxu0 %vm3843_vm10, %v3840_v7 }
 0x50a   : > { %v2050_v3 = vpop.f32.mrb[8].mxu0 }
 0x50b   : > { %v2052_v32 = vpop.f32.mrb[9].mxu0 }
 0x50c   : > { %v2992_v32 = vld [vmem:[%s5128_s9 + $0xe0] sm:$0xff] }
 0x50e   : > { %v2055_v34 = vpop.f32.mrb[10].mxu0 }
 0x50f   : > { %v3518_v37 = vpack.c.bf16 %v2055_v34, %v2050_v3  ;;  %v2057_v38 = vpop.f32.mrb[11].mxu0  ;;  %v3561_v3 = vpack.c.bf16 %v2991_v0, %v2990_v1  ;;  %v2993_v34 = vld [vmem:[%s5128_s9 + $0xe8] sm:$0xff]  ;;  %v557_v0 = vld [vmem:[%s5132_s13 + $0x30] sm:$0xff] }
 0x510   : > { %v3564_v35 = vpack.c.bf16 %v2993_v34, %v2992_v32  ;;  %v559_v34 = vld [vmem:[%s5132_s13 + $0x40] sm:$0xff] }
 0x511   : > { %3520 = vmatpush3.bf16.msk.msra.mxu0 %vm3519_vm12, %v3518_v37  ;;  %v2996_v37 = vld [vmem:[%s5128_s9 + $0xf8] sm:$0xff] }
 0x512   : > { %3521 = vmatprep.subr.bf16.mxu0 %v3841_v14  ;;  %v3567_v38 = vpack.c.bf16 %v2996_v37, %v2995_v36  ;;  %v561_v37 = vld [vmem:[%s5132_s13 + $0x50] sm:$0xf] }
 0x514   : > { %3132 = vmatmul.mubr.msk.f32.vlgmr.msra.gmra.mrb[12].mxu0 %vm2059_vm13, %v515_v39 }
 0x515   : > { %3523 = vmatpush3.bf16.msra.mxu0 %v3522_v40  ;;  %3154 = vmatprep.mubr.msk.f32.mxu0 %vm3843_vm10, %v3840_v7  ;;  %v2997_v40 = vld [vmem:[%s5128_s9 + $0x100] sm:$0xff] }
 0x516   : > { %3524 = vmatprep.subr.bf16.mxu0 %v3841_v14  ;;  %v3570_v43 = vpack.c.bf16 %v2998_v41, %v2997_v40 }
 0x519   : > { %3526 = vmatpush3.bf16.msra.mxu0 %v3525_v44  ;;  %v2999_v44 = vld [vmem:[%s5128_s9 + $0x110] sm:$0xff] }
 0x51a   : > { %3527 = vmatprep.subr.bf16.mxu0 %v3841_v14  ;;  %v3573_v46 = vpack.c.bf16 %v3000_v45, %v2999_v44 }
 0x51d   : > { %3529 = vmatpush3.bf16.msra.mxu0 %v3528_v47  ;;  %v3001_v47 = vld [vmem:[%s5128_s9 + $0x120] sm:$0xff] }
 0x51e   : > { %3530 = vmatprep.subr.bf16.mxu0 %v3841_v14  ;;  %v3576_v50 = vpack.c.bf16 %v3002_v49, %v3001_v47 }
 0x521   : > { %3532 = vmatpush3.bf16.msra.mxu0 %v3531_v51  ;;  %v3003_v51 = vld [vmem:[%s5128_s9 + $0x130] sm:$0xff] }
 0x522   : > { %3533 = vmatprep.subr.bf16.mxu0 %v3841_v14  ;;  %v3579_v53 = vpack.c.bf16 %v3004_v52, %v3003_v51 }
 0x525   : > { %3535 = vmatpush3.bf16.msra.mxu0 %v3534_v33  ;;  %v3006_v33 = vld [vmem:[%s5128_s9 + $0x140] sm:$0xff] }
 0x526   : > { %3536 = vmatprep.subr.bf16.mxu0 %v3841_v14  ;;  %v3582_v42 = vpack.c.bf16 %v3007_v2, %v3006_v33 }
 0x5e7   : > { %v4846_v4 = vpop.f32.mrb[12].mxu0 }
 0x5e8   : > { %3155 = vmatmul.mubr.msk.f32.vlgmr.msra.gmra.mrb[14].mxu0 %vm2147_vm14, %v4846_v4  ;;  %v3133_v48 = vpop.f32.mrb[13].mxu0  ;;  %v2233_v25 = vrot.slane %v4846_v4, 1  ;;  %v2318_v39 = vrot.slane %v4846_v4, 2  ;;  %v2403_v55 = vrot.slane %v4846_v4, 3  ;;  %v2488_v10 = vrot.slane %v4846_v4, 4  ;;  %v547_v4 = vld [vmem:[%s5130_s11 + $0x58] sm:$0xff] }
 0x5e9   : > { %3538 = vmatpush3.bf16.msra.mxu0 %v3537_v9  ;;  %3177 = vmatprep.mubr.msk.f32.mxu0 %vm3843_vm10, %v3840_v7  ;;  %v3594_v9 = vpack.c.bf16 %v3015_v8, %v3014_v6  ;;  %v545_v48 = vld [vmem:[%s5130_s11 + $0x48] sm:$0xff]  ;;  %v3612_v13 = vpack.c.bf16 %v547_v4, %v546_v12 }
 0x5ea   : > { %3539 = vmatprep.subr.bf16.mxu0 %v3841_v14 }
 0x5ed   : > { %3541 = vmatpush3.bf16.msra.mxu0 %v3540_v28  ;;  %v3609_v28 = vpack.c.bf16 %v545_v48, %v544_v11 }
 0x5ee   : > { %3542 = vmatprep.subr.bf16.mxu0 %v3841_v14 }
 0x5ef   : > { %3610 = vmatpush3.bf16.msra.mxu1 %v3609_v28 }
 0x5f0   : > { %3611 = vmatprep.subr.bf16.mxu1 %v3841_v14 }
 0x5f1   : > { %3544 = vmatpush3.bf16.msra.mxu0 %v3543_v15  ;;  %v548_v15 = vld [vmem:[%s5130_s11 + $0x60] sm:$0xff] }
 0x5f2   : > { %3545 = vmatprep.subr.bf16.mxu0 %v3841_v14  ;;  %v3615_v17 = vpack.c.bf16 %v549_v16, %v548_v15 }
 0x5f3   : > { %3613 = vmatpush3.bf16.msra.mxu1 %v3612_v13 }
 0x5f4   : > { %3614 = vmatprep.subr.bf16.mxu1 %v3841_v14 }
 0x5f5   : > { %3547 = vmatpush3.bf16.msra.mxu0 %v3546_v18  ;;  %v550_v18 = vld [vmem:[%s5130_s11 + $0x70] sm:$0xff] }
 0x5f6   : > { %3548 = vmatprep.subr.bf16.mxu0 %v3841_v14 }
 0x5f7   : > { %3616 = vmatpush3.bf16.msra.mxu1 %v3615_v17 }
 0x5f8   : > { %3277 = vmatprep.subr.mxu1 %v3840_v7 }
 0x5f9   : > { %3550 = vmatpush3.bf16.msra.mxu0 %v3549_v20 }
 0x5fa   : > { %3551 = vmatprep.subr.bf16.mxu0 %v3841_v14 }
 0x5fb   : > { %3278 = vmatpush3.msra.mxu1 %v550_v18 }
 0x5fc   : > { %3178 = vmatmul.mubr.msk.f32.vlgmr.msra.gmra.mrb[14].mxu0 %vm2147_vm14, %v2233_v25  ;;  %3617 = vmatprep.subr.bf16.mxu1 %v3841_v14 }
 0x5fd   : > { %3553 = vmatpush3.bf16.msra.mxu0 %v3552_v24  ;;  %3200 = vmatprep.mubr.msk.f32.mxu0 %vm3843_vm10, %v3840_v7  ;;  %v552_v24 = vld [vmem:[%s5132_s13 + $0x8] sm:$0xff] }
 0x5fe   : > { %3554 = vmatprep.subr.bf16.mxu0 %v3841_v14  ;;  %v3618_v25 = vpack.c.bf16 %v552_v24, %v551_v23 }
 0x601   : > { %3556 = vmatpush3.bf16.msra.mxu0 %v3555_v27 }
 0x602   : > { %3557 = vmatprep.subr.bf16.mxu0 %v3841_v14 }
 0x605   : > { %3559 = vmatpush3.bf16.msra.mxu0 %v3558_v31  ;;  %v556_v31 = vld [vmem:[%s5132_s13 + $0x28] sm:$0xff] }
 0x606   : > { %3560 = vmatprep.subr.bf16.mxu0 %v3841_v14  ;;  %v3624_v1 = vpack.c.bf16 %v556_v31, %v555_v30 }
 0x609   : > { %3562 = vmatpush3.bf16.msra.mxu0 %v3561_v3  ;;  %v558_v3 = vld [vmem:[%s5132_s13 + $0x38] sm:$0xff] }
 0x60a   : > { %3563 = vmatprep.subr.bf16.mxu0 %v3841_v14  ;;  %v3627_v32 = vpack.c.bf16 %v558_v3, %v557_v0 }
 0x60d   : > { %3565 = vmatpush3.bf16.msra.mxu0 %v3564_v35  ;;  %v560_v35 = vld [vmem:[%s5132_s13 + $0x48] sm:$0xff] }
 0x60e   : > { %3566 = vmatprep.subr.bf16.mxu0 %v3841_v14  ;;  %v3630_v36 = vpack.c.bf16 %v560_v35, %v559_v34 }
 0x610   : > { %3201 = vmatmul.mubr.msk.f32.vlgmr.msra.gmra.mrb[14].mxu0 %vm2147_vm14, %v2318_v39 }
 0x611   : > { %3568 = vmatpush3.bf16.msra.mxu0 %v3567_v38  ;;  %3223 = vmatprep.mubr.msk.f32.mxu0 %vm3843_vm10, %v3840_v7  ;;  %v565_v38 = vld [vmem:[%s5131_s12] sm:$0x1] }
 0x612   : > { %3569 = vmatprep.subr.bf16.mxu0 %v3841_v14 }
 0x615   : > { %3571 = vmatpush3.bf16.msra.mxu0 %v3570_v43 }
 0x616   : > { %3572 = vmatprep.subr.bf16.mxu0 %v3841_v14 }
 0x619   : > { %3574 = vmatpush3.bf16.msra.mxu0 %v3573_v46 }
 0x61a   : > { %3575 = vmatprep.subr.bf16.mxu0 %v3841_v14 }
 0x61d   : > { %3577 = vmatpush3.bf16.msra.mxu0 %v3576_v50 }
 0x61e   : > { %3578 = vmatprep.subr.bf16.mxu0 %v3841_v14 }
 0x621   : > { %3580 = vmatpush3.bf16.msra.mxu0 %v3579_v53 }
 0x622   : > { %3581 = vmatprep.subr.bf16.mxu0 %v3841_v14 }
 0x624   : > { %3224 = vmatmul.mubr.msk.f32.vlgmr.msra.gmra.mrb[14].mxu0 %vm2147_vm14, %v2403_v55 }
 0x625   : > { %3583 = vmatpush3.bf16.msra.mxu0 %v3582_v42  ;;  %3246 = vmatprep.mubr.msk.f32.mxu0 %vm3843_vm10, %v3840_v7 }
 0x626   : > { %3584 = vmatprep.subr.bf16.mxu0 %v3841_v14 }
 0x629   : > { %3586 = vmatpush3.bf16.msra.mxu0 %v3585_v58 }
 0x62a   : > { %3587 = vmatprep.subr.bf16.mxu0 %v3841_v14 }
 0x62d   : > { %3589 = vmatpush3.bf16.msra.mxu0 %v3588_v60 }
 0x62e   : > { %3590 = vmatprep.subr.bf16.mxu0 %v3841_v14 }
 0x631   : > { %3592 = vmatpush3.bf16.msra.mxu0 %v3591_v5 }
 0x632   : > { %3593 = vmatprep.subr.bf16.mxu0 %v3841_v14 }
 0x635   : > { %3595 = vmatpush3.bf16.msra.mxu0 %v3594_v9 }
 0x638   : > { %3247 = vmatmul.mubr.msk.f32.vlgmr.msra.gmra.mrb[14].mxu0 %vm2147_vm14, %v2488_v10 }
 0x70b   : > { %v2557_v63 = vpop.f32.mrb[14].mxu0 }
 0x70c   : > { %v3644_v20 = vadd.f32 %v2557_v63, %v564_v19  ;;  %v3248_v22 = vpop.f32.mrb[15].mxu0 }
 0x70e   : > { %3768 = vtanh.f32 %v3644_v20 }
 0x718   : > { %v3769_v27 = vpop.eup %3768 }
 0x719   : > { %3280 = vmatmul.mubr.msk.f32.vlgmr.msra.gmra.mrb[14].mxu1 %vm2563_vm15, %v3769_v27 }
 0x71a   : > { %3619 = vmatpush3.bf16.msra.mxu1 %v3618_v25  ;;  %3304 = vmatprep.mubr.msk.f32.mxu1 %vm3843_vm10, %v3840_v7 }
 0x71b   : > { %3620 = vmatprep.subr.bf16.mxu1 %v3841_v14 }
 0x71e   : > { %3622 = vmatpush3.bf16.msra.mxu1 %v3621_v29 }
 0x71f   : > { %3623 = vmatprep.subr.bf16.mxu1 %v3841_v14 }
 0x722   : > { %3625 = vmatpush3.bf16.msra.mxu1 %v3624_v1 }
 0x723   : > { %3626 = vmatprep.subr.bf16.mxu1 %v3841_v14 }
 0x726   : > { %3628 = vmatpush3.bf16.msra.mxu1 %v3627_v32 }
 0x727   : > { %3629 = vmatprep.subr.bf16.mxu1 %v3841_v14 }
 0x72a   : > { %3631 = vmatpush3.bf16.msra.mxu1 %v3630_v36 }
 0x72b   : > { %3302 = vmatprep.subr.mxu1 %v3840_v7  ;;  %v566_v7 = vld [vmem:[%s5133_s14] sm:$0x1] }
 0x72e   : > { %3303 = vmatpush3.msk.msra.mxu1 %vm1075_vm4, %v561_v37 }
 0x7ec   : > { %v2633_v39 = vpop.f32.mrb[14].mxu1 }
 0x7ed   : > { %v2634_v40 = vadd.f32 %v2633_v39, %v565_v38  ;;  %v3281_v41 = vpop.f32.mrb[15].mxu1 }
 0x7ef   : > { %3770 = vtanh.f32 %v2634_v40 }
 0x7f9   : > { %v3771_v43 = vpop.eup %3770 }
 0x7fa   : > { %3305 = vmatmul.mubr.msk.f32.vlgmr.msra.gmra.mrb[16].mxu1 %vm1401_vm9, %v3771_v43 }
 0x8cd   : > { %v2710_v14 = vpop.f32.mrb[16].mxu1 }
 0x8ce   : > { %v2711_v44 = vadd.f32 %v2710_v14, %v566_v7  ;;  %v3306_v45 = vpop.f32.mrb[17].mxu1 }
 0x8d0   : > { %v2715_v46 = vsel %vm2714_vm0, %v2711_v44, -inf }
 0x8d1   : > { %2716 = vmax.xlane.f32.xlu0 %v2715_v46 }
 0x95e   : > { %v2717_v47 = vpop.xlane.xlu0 %2716 }
 0x95f   : > { %v2718_v49 = vsub.f32 %v2711_v44, %v2717_v47 }
 0x961   : > { %v2719_v50 = vmul.f32 1.442695, %v2718_v49 }
 0x963   : > { %3772 = vpow2.f32 %v2719_v50 }
 0x96d   : > { %v3773_v51 = vpop.eup %3772 }
 0x96e   : > { %v2721_v52 = vsel %vm2714_vm0, %v3773_v51, 0.0 }
 0x96f   : > { %2722 = vadd.xlane.f32.xlu0 %v2721_v52 }
 0x9fc   : > { %v2723_v53 = vpop.xlane.xlu0 %2722 }
 0x9fd   : > { %3774 = vrcp.f32 %v2723_v53 }
 0xa07   : > { %v3775_v33 = vpop.eup %3774 }
 0xa08   : > { %v2725_v2 = vmul.f32 %v3775_v33, %v3773_v51 }
 0xa0a   : > { %2726 = vst.msk [vmem:[%s486_s30] sm:$0x1] %vm2714_vm0, %v2725_v2 }
 0xa0b   : > { %3789 = shalt.err (!%p3786_p3)
}
 0xa0c   : > { %s3790_s21 = scalar_lea.hbm %s5076_s23, 16  ;;  %s3794_s30 = scalar_lea.hbm %s5134_s15, 32 }
 0xa0d   : > { %p3791_p4 = scmp.ne.s32.totalorder %s5076_s23, %s3790_s21  ;;  %p3795_p9 = scmp.lt.u32.totalorder %s5076_s23, %s5134_s15 }
 0xa0e   : > { %p3796_p10 = scmp.lt.u32.totalorder %s3794_s30, %s3790_s21  ;;  %p3798_p12 = scmp.lt.u32.totalorder %s3790_s21, %s5076_s23 }
 0xa0f   : > { %p3792_p7 = pnand %p3791_p4, %p3963_p5 }
 0xa10   : > { %p3797_p11 = por %p3796_p10, %p3795_p9 }
 0xa11   : > { %p3793_p8 = pneg %p3792_p7 }
 0xa12   : > { %p3799_p13 = por %p3798_p12, %p3797_p11 }
 0xa14   : > { %p3800_p0 = pnand %p3799_p13, %p3793_p8 }
 0xa16   : > { %3803 = shalt.err (!%p3800_p0)
}
 0xa17   : > { %3701 = dma.vmem_to_hbm [thread:$0]  (%p3963_p5), %s5078_s27, 16, %s5076_s23, %s2728_s20  }
 0xa18 PF: > { %s5149_s18 = sld [smem:[#allocation7_spill]]  ;;  %s5150_s22 = sld [smem:[#allocation5_spill]] }
 0xa1e   : > { %p3707_p1 = scmp.ge.s32.totalorder %s5149_s18, 2  ;;  %s2752_s25 = sand.u32 1, %s5150_s22  }
 0xa1f   : > { %s2753_s29 = scalar_lea.sflag [#allocation3], %s2752_s25 }
 0xa20   : > { %p3704_p2 = pnand %p3707_p1, %p3967_p6 }
 0xa22   : > { %3821 = dma.done.wait (!%p3704_p2), %s2753_s29, 16  }
 0xa23   : > { %3823 = vsyncadd (!%p3704_p2), %s2753_s29, 4294967280  ;;  %s5152_s21 = sld [smem:[#allocation8_spill]]  ;;  %s5153_s26 = sld [smem:[#allocation6_spill]] }
 0xa24   : > { %s5154_s20 = sld [smem:[#allocation9_spill]]  ;;  %s5155_s18 = smov %s3830_s19 }
 0xa29   : > { %p25_p3 = scmp.ge.s32.totalorder %s5152_s21, 4   ;;  %s5156_s19 = smov %s5153_s26 }
 0xa2b   :  { %27 = sbr.rel (!%p25_p3) target bundleno = 3 (0x3), region = 127 }
 0xa32   :  { %2757 = vsyncpa [#allocation3], 1 }
 0xa33   :  { %2759 = vsyncpa [#allocation3 + $0x1], 1 }

</bundles_post_ra>
